<compile_context>
chip_gen: v7x
topology: tpu7x:2x2x1
jax: 0.10.0
libtpu: 0.0.40
codegen_flags: <defaults>
</compile_context>

<pallas_src>
import functools

import jax
import jax.numpy as jnp
from jax import lax
from jax.experimental import pallas as pl
from jax.experimental.pallas import tpu as pltpu

# Model config implied by _info_consistency_check defaults:
#   D_in = 7, hidden_sizes = [90] * 6, D_out = 1, activation = ReLU
D_IN = 7
HIDDEN = 90
H_PAD = 128                   # hidden width padded to a full lane group
N_HIDDEN = 6                  # six hidden widths -> 5 hidden->hidden Linears
N_HIDDEN_MM = N_HIDDEN - 1    # number of stacked (90, 90) hidden layers
D_OUT = 1


def _layer_dims():
    dims = [(D_IN, HIDDEN)]
    dims += [(HIDDEN, HIDDEN)] * N_HIDDEN_MM
    dims.append((HIDDEN, D_OUT))
    return dims


def init_params(key):
    """PyTorch nn.Linear-style init: U(-1/sqrt(fan_in)); W stored as (out, in), b as (out, 1)."""
    params = []
    for (din, dout) in _layer_dims():
        key, kw, kb = jax.random.split(key, 3)
        bound = 1.0 / jnp.sqrt(jnp.float32(din))
        w = jax.random.uniform(kw, (dout, din), jnp.float32, -bound, bound)
        b = jax.random.uniform(kb, (dout, 1), jnp.float32, -bound, bound)
        params.append((w, b))
    return params


def _round_up(n, m):
    return ((n + m - 1) // m) * m


def _is_v7x():
    """Best-effort detection of a 2-TensorCore-per-chip part (v7x)."""
    try:
        kind = jax.devices()[0].device_kind.lower()
    except Exception:
        return False
    return ("v7" in kind) or ("7x" in kind)


def mlp_kernel(x_ref, w0_ref, b0_ref, wh_ref, bh_ref, wo_ref, bo_ref, out_ref):
    """Whole forward pass for one batch tile (batch on the lane axis of h / out).

    x_ref  : (Bt, D_IN)           f32    batch rows straight from HBM (no wrapper transpose)
    w0_ref : (H_PAD, D_IN)        f32
    b0_ref : (H_PAD, 1)           f32    (zero in padded rows)
    wh_ref : (5, H_PAD, H_PAD)    bf16   stacked hidden->hidden weights (zero-padded)
    bh_ref : (5, H_PAD, 1)        f32
    wo_ref : (D_OUT, H_PAD)       bf16
    bo_ref : (D_OUT, 1)           f32
    out_ref: (D_OUT, Bt)          f32    lane-dense output slab
    """
    # Layer 0: NT matmul contracting x's feature (last) dim -> lane-dense (H_PAD, Bt),
    # f32 operands / f32 accumulation (K = 7, negligible MXU cost).
    h = lax.dot_general(
        w0_ref[...], x_ref[...],
        dimension_numbers=(((1,), (1,)), ((), ())),
        preferred_element_type=jnp.float32)
    # Bias + ReLU on the f32 accumulator, then carry h in bf16 (halves vreg/VMEM traffic).
    h = jnp.maximum(h + b0_ref[...], 0.0).astype(jnp.bfloat16)

    # Hidden layers, statically unrolled.  Padded rows stay exactly zero.
    for i in range(N_HIDDEN_MM):
        acc = jnp.dot(wh_ref[i], h, preferred_element_type=jnp.float32)
        h = jnp.maximum(acc + bh_ref[i], 0.0).astype(jnp.bfloat16)

    # Output layer (no activation): (1, H_PAD) @ (H_PAD, Bt) -> lane-dense (1, Bt).
    o = jnp.dot(wo_ref[...], h, preferred_element_type=jnp.float32) + bo_ref[...]
    out_ref[...] = o.astype(out_ref.dtype)


def _pad_params(params):
    """Zero-pad HIDDEN 90 -> 128 so all tiles are (8,128)-aligned; math is unchanged."""
    pad_h = H_PAD - HIDDEN
    w0 = jnp.pad(params[0][0], ((0, pad_h), (0, 0)))                       # (128, 7)  f32
    b0 = jnp.pad(params[0][1], ((0, pad_h), (0, 0)))                       # (128, 1)  f32
    wh = jnp.stack([params[1 + i][0] for i in range(N_HIDDEN_MM)])         # (5, 90, 90)
    wh = jnp.pad(wh, ((0, 0), (0, pad_h), (0, pad_h))).astype(jnp.bfloat16)
    bh = jnp.stack([params[1 + i][1] for i in range(N_HIDDEN_MM)])         # (5, 90, 1)
    bh = jnp.pad(bh, ((0, 0), (0, pad_h), (0, 0)))                         # (5, 128, 1) f32
    wo = jnp.pad(params[-1][0], ((0, 0), (0, pad_h))).astype(jnp.bfloat16) # (1, 128)  bf16
    bo = params[-1][1]                                                     # (1, 1)    f32
    return w0, b0, wh, bh, wo, bo


@functools.partial(jax.jit, static_argnames=("batch_tile",))
def mlp_forward(x, params, *, batch_tile=2048):
    """x: (B, D_IN) float32  ->  (B, D_OUT) float32."""
    B, d_in = x.shape
    assert d_in == D_IN
    assert batch_tile % 128 == 0

    # Grid sizing: single tile covering the batch on 1-TC parts; on v7x split the *real*
    # batch across two half tiles so both TensorCores get useful work.
    if B <= batch_tile:
        if _is_v7x():
            bt = max(128, _round_up(pl.cdiv(B, 2), 128))
            grid_n = 2
        else:
            bt = _round_up(B, 128)
            grid_n = 1
    else:
        bt = batch_tile
        grid_n = pl.cdiv(B, bt)
    b_pad = grid_n * bt
    x_pad = x if b_pad == B else jnp.pad(x, ((0, b_pad - B), (0, 0)))

    w0, b0, wh, bh, wo, bo = _pad_params(params)

    in_specs = [
        pl.BlockSpec((bt, D_IN), lambda i: (i, 0)),        # x (batch-tiled, no transpose)
        pl.BlockSpec(w0.shape, lambda i: (0, 0)),          # constant-index weights:
        pl.BlockSpec(b0.shape, lambda i: (0, 0)),          #   DMA'd once, not re-fetched
        pl.BlockSpec(wh.shape, lambda i: (0, 0, 0)),
        pl.BlockSpec(bh.shape, lambda i: (0, 0, 0)),
        pl.BlockSpec(wo.shape, lambda i: (0, 0)),
        pl.BlockSpec(bo.shape, lambda i: (0, 0)),
    ]
    out_spec = pl.BlockSpec((D_OUT, bt), lambda i: (0, i))  # lane-dense output slab

    flops = 2 * b_pad * (D_IN * H_PAD + N_HIDDEN_MM * H_PAD * H_PAD + H_PAD * D_OUT)
    bytes_accessed = (x_pad.size * 4 + b_pad * D_OUT * 4
                      + (w0.size + b0.size + bh.size + bo.size) * 4
                      + (wh.size + wo.size) * 2)

    out_t = pl.pallas_call(
        mlp_kernel,
        out_shape=jax.ShapeDtypeStruct((D_OUT, b_pad), jnp.float32),
        grid=(grid_n,),
        in_specs=in_specs,
        out_specs=out_spec,
        compiler_params=pltpu.CompilerParams(
            dimension_semantics=("parallel",)),
        cost_estimate=pl.CostEstimate(
            flops=flops, transcendentals=0, bytes_accessed=bytes_accessed),
    )(x_pad, w0, b0, wh, bh, wo, bo)

    return out_t.T[:B]                                      # (B, D_OUT) f32


def mlp_reference(x, params):
    """Pure-JAX reference mirroring the kernel's dtype discipline.

    Layer 0 in f32 (highest precision), hidden/output layers with bf16 operands and
    f32 accumulation — matching the kernel's semantics rather than a strict-f32 forward.
    """
    w0, b0 = params[0]
    h = jnp.dot(x, w0.T, precision=lax.Precision.HIGHEST,
                preferred_element_type=jnp.float32) + b0.T
    h = jnp.maximum(h, 0.0)
    for (w, b) in params[1:-1]:
        a = jnp.dot(h.astype(jnp.bfloat16), w.T.astype(jnp.bfloat16),
                    preferred_element_type=jnp.float32) + b.T
        h = jnp.maximum(a, 0.0)
    w, b = params[-1]
    return jnp.dot(h.astype(jnp.bfloat16), w.T.astype(jnp.bfloat16),
                   preferred_element_type=jnp.float32) + b.T


if __name__ == "__main__":
    key = jax.random.PRNGKey(0)
    key_p, key_x = jax.random.split(key)

    params = init_params(key_p)
    batch = 300                       # ragged on purpose; wrapper rounds up to 128 multiples
    x = jax.random.normal(key_x, (batch, D_IN), jnp.float32)

    out = mlp_forward(x, params)      # default batch_tile=2048
    out = jax.block_until_ready(out)

    ref = mlp_reference(x, params)
    assert out.shape == (batch, D_OUT)
    assert jnp.allclose(out, ref, atol=5e-3, rtol=5e-3), "mismatch vs reference"

    print("KERNEL_OK")
</pallas_src>

<mosaic_0001>
module attributes {stable_mosaic.version = 11 : i64} {
  func.func @mlp_kernel(%arg0: i32, %arg1: memref<384x7xf32, #tpu.memory_space<vmem>>, %arg2: memref<128x7xf32, #tpu.memory_space<vmem>>, %arg3: memref<128x1xf32, #tpu.memory_space<vmem>>, %arg4: memref<5x128x128xbf16, #tpu.memory_space<vmem>>, %arg5: memref<5x128x1xf32, #tpu.memory_space<vmem>>, %arg6: memref<1x128xbf16, #tpu.memory_space<vmem>>, %arg7: memref<1x1xf32, #tpu.memory_space<vmem>>, %arg8: memref<1x384xf32, #tpu.memory_space<vmem>>) attributes {dimension_semantics = [#tpu.dimension_semantics<parallel>], iteration_bounds = array<i64: 1>, scalar_prefetch = 0 : i64, scratch_operands = 0 : i64, tpu.core_type = #tpu.core_type<tc>, window_params = [{transform_indices = @transform_0, window_bounds = array<i64: 384, 7>}, {pipeline_mode = #tpu.pipeline_mode<synchronous>, transform_indices = @transform_1, window_bounds = array<i64: 128, 7>}, {pipeline_mode = #tpu.pipeline_mode<synchronous>, transform_indices = @transform_2, window_bounds = array<i64: 128, 1>}, {pipeline_mode = #tpu.pipeline_mode<synchronous>, transform_indices = @transform_3, window_bounds = array<i64: 5, 128, 128>}, {pipeline_mode = #tpu.pipeline_mode<synchronous>, transform_indices = @transform_4, window_bounds = array<i64: 5, 128, 1>}, {pipeline_mode = #tpu.pipeline_mode<synchronous>, transform_indices = @transform_5, window_bounds = array<i64: 1, 128>}, {pipeline_mode = #tpu.pipeline_mode<synchronous>, transform_indices = @transform_6, window_bounds = array<i64: 1, 1>}, {transform_indices = @transform_7, window_bounds = array<i64: 1, 384>}]} {
    %c0 = arith.constant 0 : index
    %c0_0 = arith.constant 0 : index
    %0 = vector.load %arg2[%c0, %c0_0] : memref<128x7xf32, #tpu.memory_space<vmem>>, vector<128x7xf32>
    %c0_1 = arith.constant 0 : index
    %c0_2 = arith.constant 0 : index
    %1 = vector.load %arg1[%c0_1, %c0_2] : memref<384x7xf32, #tpu.memory_space<vmem>>, vector<384x7xf32>
    %cst = arith.constant dense<0.000000e+00> : vector<128x384xf32>
    %2 = tpu.matmul %0, %1, %cst {dimension_numbers = #tpu.dot_dimension_numbers<[1], [1], [0], [0], [0, 0, 1, 0], [], []>} : vector<128x7xf32>, vector<384x7xf32>, vector<128x384xf32> -> vector<128x384xf32>
    %c0_3 = arith.constant 0 : index
    %c0_4 = arith.constant 0 : index
    %3 = vector.load %arg3[%c0_3, %c0_4] : memref<128x1xf32, #tpu.memory_space<vmem>>, vector<128x1xf32>
    %4 = vector.broadcast %3 : vector<128x1xf32> to vector<128x384xf32>
    %5 = arith.addf %2, %4 : vector<128x384xf32>
    %cst_5 = arith.constant 0.000000e+00 : f32
    %6 = vector.broadcast %cst_5 : f32 to vector<128x384xf32>
    %7 = arith.maximumf %5, %6 : vector<128x384xf32>
    %8 = arith.truncf %7 : vector<128x384xf32> to vector<128x384xbf16>
    %c0_6 = arith.constant 0 : index
    %c0_7 = arith.constant 0 : index
    %c0_8 = arith.constant 0 : index
    %9 = vector.load %arg4[%c0_6, %c0_7, %c0_8] : memref<5x128x128xbf16, #tpu.memory_space<vmem>>, vector<1x128x128xbf16>
    %10 = vector.shape_cast %9 : vector<1x128x128xbf16> to vector<128x128xbf16>
    %cst_9 = arith.constant dense<0.000000e+00> : vector<128x384xf32>
    %11 = tpu.matmul %10, %8, %cst_9 {dimension_numbers = #tpu.dot_dimension_numbers<[1], [0], [0], [1], [0, 0, 1, 1], [], []>} : vector<128x128xbf16>, vector<128x384xbf16>, vector<128x384xf32> -> vector<128x384xf32>
    %c0_10 = arith.constant 0 : index
    %c0_11 = arith.constant 0 : index
    %c0_12 = arith.constant 0 : index
    %12 = vector.load %arg5[%c0_10, %c0_11, %c0_12] : memref<5x128x1xf32, #tpu.memory_space<vmem>>, vector<1x128x1xf32>
    %13 = vector.shape_cast %12 : vector<1x128x1xf32> to vector<128x1xf32>
    %14 = vector.broadcast %13 : vector<128x1xf32> to vector<128x384xf32>
    %15 = arith.addf %11, %14 : vector<128x384xf32>
    %cst_13 = arith.constant 0.000000e+00 : f32
    %16 = vector.broadcast %cst_13 : f32 to vector<128x384xf32>
    %17 = arith.maximumf %15, %16 : vector<128x384xf32>
    %18 = arith.truncf %17 : vector<128x384xf32> to vector<128x384xbf16>
    %c1 = arith.constant 1 : index
    %c0_14 = arith.constant 0 : index
    %c0_15 = arith.constant 0 : index
    %19 = vector.load %arg4[%c1, %c0_14, %c0_15] : memref<5x128x128xbf16, #tpu.memory_space<vmem>>, vector<1x128x128xbf16>
    %20 = vector.shape_cast %19 : vector<1x128x128xbf16> to vector<128x128xbf16>
    %cst_16 = arith.constant dense<0.000000e+00> : vector<128x384xf32>
    %21 = tpu.matmul %20, %18, %cst_16 {dimension_numbers = #tpu.dot_dimension_numbers<[1], [0], [0], [1], [0, 0, 1, 1], [], []>} : vector<128x128xbf16>, vector<128x384xbf16>, vector<128x384xf32> -> vector<128x384xf32>
    %c1_17 = arith.constant 1 : index
    %c0_18 = arith.constant 0 : index
    %c0_19 = arith.constant 0 : index
    %22 = vector.load %arg5[%c1_17, %c0_18, %c0_19] : memref<5x128x1xf32, #tpu.memory_space<vmem>>, vector<1x128x1xf32>
    %23 = vector.shape_cast %22 : vector<1x128x1xf32> to vector<128x1xf32>
    %24 = vector.broadcast %23 : vector<128x1xf32> to vector<128x384xf32>
    %25 = arith.addf %21, %24 : vector<128x384xf32>
    %cst_20 = arith.constant 0.000000e+00 : f32
    %26 = vector.broadcast %cst_20 : f32 to vector<128x384xf32>
    %27 = arith.maximumf %25, %26 : vector<128x384xf32>
    %28 = arith.truncf %27 : vector<128x384xf32> to vector<128x384xbf16>
    %c2 = arith.constant 2 : index
    %c0_21 = arith.constant 0 : index
    %c0_22 = arith.constant 0 : index
    %29 = vector.load %arg4[%c2, %c0_21, %c0_22] : memref<5x128x128xbf16, #tpu.memory_space<vmem>>, vector<1x128x128xbf16>
    %30 = vector.shape_cast %29 : vector<1x128x128xbf16> to vector<128x128xbf16>
    %cst_23 = arith.constant dense<0.000000e+00> : vector<128x384xf32>
    %31 = tpu.matmul %30, %28, %cst_23 {dimension_numbers = #tpu.dot_dimension_numbers<[1], [0], [0], [1], [0, 0, 1, 1], [], []>} : vector<128x128xbf16>, vector<128x384xbf16>, vector<128x384xf32> -> vector<128x384xf32>
    %c2_24 = arith.constant 2 : index
    %c0_25 = arith.constant 0 : index
    %c0_26 = arith.constant 0 : index
    %32 = vector.load %arg5[%c2_24, %c0_25, %c0_26] : memref<5x128x1xf32, #tpu.memory_space<vmem>>, vector<1x128x1xf32>
    %33 = vector.shape_cast %32 : vector<1x128x1xf32> to vector<128x1xf32>
    %34 = vector.broadcast %33 : vector<128x1xf32> to vector<128x384xf32>
    %35 = arith.addf %31, %34 : vector<128x384xf32>
    %cst_27 = arith.constant 0.000000e+00 : f32
    %36 = vector.broadcast %cst_27 : f32 to vector<128x384xf32>
    %37 = arith.maximumf %35, %36 : vector<128x384xf32>
    %38 = arith.truncf %37 : vector<128x384xf32> to vector<128x384xbf16>
    %c3 = arith.constant 3 : index
    %c0_28 = arith.constant 0 : index
    %c0_29 = arith.constant 0 : index
    %39 = vector.load %arg4[%c3, %c0_28, %c0_29] : memref<5x128x128xbf16, #tpu.memory_space<vmem>>, vector<1x128x128xbf16>
    %40 = vector.shape_cast %39 : vector<1x128x128xbf16> to vector<128x128xbf16>
    %cst_30 = arith.constant dense<0.000000e+00> : vector<128x384xf32>
    %41 = tpu.matmul %40, %38, %cst_30 {dimension_numbers = #tpu.dot_dimension_numbers<[1], [0], [0], [1], [0, 0, 1, 1], [], []>} : vector<128x128xbf16>, vector<128x384xbf16>, vector<128x384xf32> -> vector<128x384xf32>
    %c3_31 = arith.constant 3 : index
    %c0_32 = arith.constant 0 : index
    %c0_33 = arith.constant 0 : index
    %42 = vector.load %arg5[%c3_31, %c0_32, %c0_33] : memref<5x128x1xf32, #tpu.memory_space<vmem>>, vector<1x128x1xf32>
    %43 = vector.shape_cast %42 : vector<1x128x1xf32> to vector<128x1xf32>
    %44 = vector.broadcast %43 : vector<128x1xf32> to vector<128x384xf32>
    %45 = arith.addf %41, %44 : vector<128x384xf32>
    %cst_34 = arith.constant 0.000000e+00 : f32
    %46 = vector.broadcast %cst_34 : f32 to vector<128x384xf32>
    %47 = arith.maximumf %45, %46 : vector<128x384xf32>
    %48 = arith.truncf %47 : vector<128x384xf32> to vector<128x384xbf16>
    %c4 = arith.constant 4 : index
    %c0_35 = arith.constant 0 : index
    %c0_36 = arith.constant 0 : index
    %49 = vector.load %arg4[%c4, %c0_35, %c0_36] : memref<5x128x128xbf16, #tpu.memory_space<vmem>>, vector<1x128x128xbf16>
    %50 = vector.shape_cast %49 : vector<1x128x128xbf16> to vector<128x128xbf16>
    %cst_37 = arith.constant dense<0.000000e+00> : vector<128x384xf32>
    %51 = tpu.matmul %50, %48, %cst_37 {dimension_numbers = #tpu.dot_dimension_numbers<[1], [0], [0], [1], [0, 0, 1, 1], [], []>} : vector<128x128xbf16>, vector<128x384xbf16>, vector<128x384xf32> -> vector<128x384xf32>
    %c4_38 = arith.constant 4 : index
    %c0_39 = arith.constant 0 : index
    %c0_40 = arith.constant 0 : index
    %52 = vector.load %arg5[%c4_38, %c0_39, %c0_40] : memref<5x128x1xf32, #tpu.memory_space<vmem>>, vector<1x128x1xf32>
    %53 = vector.shape_cast %52 : vector<1x128x1xf32> to vector<128x1xf32>
    %54 = vector.broadcast %53 : vector<128x1xf32> to vector<128x384xf32>
    %55 = arith.addf %51, %54 : vector<128x384xf32>
    %cst_41 = arith.constant 0.000000e+00 : f32
    %56 = vector.broadcast %cst_41 : f32 to vector<128x384xf32>
    %57 = arith.maximumf %55, %56 : vector<128x384xf32>
    %58 = arith.truncf %57 : vector<128x384xf32> to vector<128x384xbf16>
    %c0_42 = arith.constant 0 : index
    %c0_43 = arith.constant 0 : index
    %59 = vector.load %arg6[%c0_42, %c0_43] : memref<1x128xbf16, #tpu.memory_space<vmem>>, vector<1x128xbf16>
    %cst_44 = arith.constant dense<0.000000e+00> : vector<1x384xf32>
    %60 = tpu.matmul %59, %58, %cst_44 {dimension_numbers = #tpu.dot_dimension_numbers<[1], [0], [0], [1], [0, 0, 1, 1], [], []>} : vector<1x128xbf16>, vector<128x384xbf16>, vector<1x384xf32> -> vector<1x384xf32>
    %c0_45 = arith.constant 0 : index
    %c0_46 = arith.constant 0 : index
    %61 = vector.load %arg7[%c0_45, %c0_46] : memref<1x1xf32, #tpu.memory_space<vmem>>, vector<1x1xf32>
    %62 = vector.broadcast %61 : vector<1x1xf32> to vector<1x384xf32>
    %63 = arith.addf %60, %62 : vector<1x384xf32>
    %c0_47 = arith.constant 0 : index
    %c0_48 = arith.constant 0 : index
    %64 = vector.load %arg8[%c0_47, %c0_48] : memref<1x384xf32, #tpu.memory_space<vmem>>, vector<1x384xf32>
    tpu.vector_store %arg8[%c0_47, %c0_48], %63 {strides = array<i32>} : memref<1x384xf32, #tpu.memory_space<vmem>>, vector<1x384xf32>,
    return
  }
  func.func @transform_0(%arg0: i32) -> (i32, i32) {
    %c0_i32 = arith.constant 0 : i32
    %c0_i32_0 = arith.constant 0 : i32
    return %arg0, %c0_i32 : i32, i32
  }
  func.func @transform_1(%arg0: i32) -> (i32, i32) {
    %c0_i32 = arith.constant 0 : i32
    %c0_i32_0 = arith.constant 0 : i32
    %c0_i32_1 = arith.constant 0 : i32
    return %c0_i32, %c0_i32_0 : i32, i32
  }
  func.func @transform_2(%arg0: i32) -> (i32, i32) {
    %c0_i32 = arith.constant 0 : i32
    %c0_i32_0 = arith.constant 0 : i32
    %c0_i32_1 = arith.constant 0 : i32
    return %c0_i32, %c0_i32_0 : i32, i32
  }
  func.func @transform_3(%arg0: i32) -> (i32, i32, i32) {
    %c0_i32 = arith.constant 0 : i32
    %c0_i32_0 = arith.constant 0 : i32
    %c0_i32_1 = arith.constant 0 : i32
    %c0_i32_2 = arith.constant 0 : i32
    return %c0_i32, %c0_i32_0, %c0_i32_1 : i32, i32, i32
  }
  func.func @transform_4(%arg0: i32) -> (i32, i32, i32) {
    %c0_i32 = arith.constant 0 : i32
    %c0_i32_0 = arith.constant 0 : i32
    %c0_i32_1 = arith.constant 0 : i32
    %c0_i32_2 = arith.constant 0 : i32
    return %c0_i32, %c0_i32_0, %c0_i32_1 : i32, i32, i32
  }
  func.func @transform_5(%arg0: i32) -> (i32, i32) {
    %c0_i32 = arith.constant 0 : i32
    %c0_i32_0 = arith.constant 0 : i32
    %c0_i32_1 = arith.constant 0 : i32
    return %c0_i32, %c0_i32_0 : i32, i32
  }
  func.func @transform_6(%arg0: i32) -> (i32, i32) {
    %c0_i32 = arith.constant 0 : i32
    %c0_i32_0 = arith.constant 0 : i32
    %c0_i32_1 = arith.constant 0 : i32
    return %c0_i32, %c0_i32_0 : i32, i32
  }
  func.func @transform_7(%arg0: i32) -> (i32, i32) {
    %c0_i32 = arith.constant 0 : i32
    %c0_i32_0 = arith.constant 0 : i32
    return %c0_i32, %arg0 : i32, i32
  }
}

</mosaic_0001>

<bundles_post_ra>
// kernel: mlp_forward.1
= control target key start
LH: loop header
LB: loop body
LE: loop exit
PB: predicated region body
PF: predicated region fallthrough
CT: control target
= control target key end

     0   :  { %vm189_vm0 = vcmask 56320   ;;  %v3917_v0 = vmov 0   ;;  %vm3919_vm2 = vmmov 0   ;;  %s5349_s2 = inlined_call_operand.vmem [shape: f32[128,1], index: 2, kind: input, shape index: {}]   ;;  %s5350_s0 = inlined_call_operand.vmem [shape: f32[384,7], index: 0, kind: input, shape index: {}]   ;;  %s5351_s1 = inlined_call_operand.vmem [shape: f32[128,7], index: 1, kind: input, shape index: {}]   ;;  %s5352_s4 = inlined_call_operand.vmem [shape: f32[5,128,1], index: 4, kind: input, shape index: {}]   ;;  %s5353_s6 = inlined_call_operand.<no memory space> [shape: f32[1,1], index: 6, kind: input, shape index: {}]   ;;  %s5354_s3 = inlined_call_operand.vmem [shape: bf16[5,128,128], index: 3, kind: input, shape index: {}]   ;;  %s5355_s5 = inlined_call_operand.vmem [shape: bf16[1,128], index: 5, kind: input, shape index: {}]   ;;  %s5356_s7 = inlined_call_operand.vmem [shape: f32[1,384], index: 7, kind: output, shape index: {}]  }
   0x1   :  { %3876 = vset.pattern.permute.xlu1 %v3917_v0  ;;  %3875 = vset.pattern.permute.xlu0 %v3917_v0  ;;  %v95_v1 = vld [vmem:[%s5349_s2 + $0x10] sm:$0xff]  ;;  %v93_v2 = vld [vmem:[%s5349_s2] sm:$0xff]  ;;  %v62_v4 = vld [vmem:[%s5350_s0 + $0x88] sm:$0xff] }
   0x2   :  { %v61_v3 = vld [vmem:[%s5350_s0 + $0x80] sm:$0xff]  ;;  %121 = vperm.xlu1 %3876, %v95_v1   ;;  %111 = vperm.xlu0 %3875, %v93_v2   ;;  %vm3977_vm1 = vmpackc.low %vm189_vm0, %vm189_vm0  ;;  %v78_v8 = vld [vmem:[%s5350_s0 + $0x108] sm:$0xff] }
   0x3   :  { %v77_v6 = vld [vmem:[%s5350_s0 + $0x100] sm:$0xff]  ;;  %v3775_v7 = vpack.c.bf16 %v62_v4, %v61_v3  ;;  %v46_v10 = vld [vmem:[%s5350_s0 + $0x8] sm:$0xff]  ;;  %v96_v13 = vld [vmem:[%s5349_s2 + $0x18] sm:$0xff] }
   0x4   :  { %v45_v9 = vld [vmem:[%s5350_s0] sm:$0xff]  ;;  %v3823_v11 = vpack.c.bf16 %v78_v8, %v77_v6  ;;  %v94_v14 = vld [vmem:[%s5349_s2 + $0x8] sm:$0xff]  ;;  %v63_v15 = vld [vmem:[%s5350_s0 + $0x90] sm:$0xff] }
   0x5   :  { %v3778_v12 = vpack.c.bf16 %v46_v10, %v45_v9  ;;  %3777 = vmatprep.subr.msk.bf16.mxu0 %vm3977_vm1, %v3775_v7  ;;  %v64_v16 = vld [vmem:[%s5350_s0 + $0x98] sm:$0xff]  ;;  %v79_v18 = vld [vmem:[%s5350_s0 + $0x110] sm:$0xff]  ;;  %v98_v23 = vld [vmem:[%s5349_s2 + $0x28] sm:$0xff] }
   0x6   :  { %3825 = vmatprep.subr.msk.bf16.mxu1 %vm3977_vm1, %v3823_v11  ;;  %v3781_v17 = vpack.c.bf16 %v64_v16, %v63_v15  ;;  %v80_v19 = vld [vmem:[%s5350_s0 + $0x118] sm:$0xff]  ;;  %126 = vperm.xlu1 %3876, %v96_v13   ;;  %v47_v21 = vld [vmem:[%s5350_s0 + $0x10] sm:$0xff]  ;;  %v97_v24 = vld [vmem:[%s5349_s2 + $0x20] sm:$0xff] }
   0x7   :  { %3780 = vmatpush3.bf16.xpose.msk.msra.mxu0 %vm3977_vm1, %v3778_v12  ;;  %3828 = vmatpush3.bf16.xpose.msk.msra.mxu1 %vm3977_vm1, %v3823_v11  ;;  %v3829_v20 = vpack.c.bf16 %v80_v19, %v79_v18  ;;  %v48_v22 = vld [vmem:[%s5350_s0 + $0x18] sm:$0xff]  ;;  %v65_v25 = vld [vmem:[%s5350_s0 + $0xa0] sm:$0xff]  ;;  %v66_v26 = vld [vmem:[%s5350_s0 + $0xa8] sm:$0xff] }
   0x8   :  { %116 = vperm.xlu0 %3875, %v94_v14   ;;  %3783 = vmatprep.subr.msk.bf16.mxu0 %vm3977_vm1, %v3781_v17  ;;  %v3784_v27 = vpack.c.bf16 %v48_v22, %v47_v21  ;;  %v81_v28 = vld [vmem:[%s5350_s0 + $0x120] sm:$0xff]  ;;  %v82_v29 = vld [vmem:[%s5350_s0 + $0x128] sm:$0xff]  ;;  %v100_v30 = vld [vmem:[%s5349_s2 + $0x38] sm:$0xff]  ;;  %v3787_v31 = vpack.c.bf16 %v66_v26, %v65_v25 }
   0x9   :  { %3831 = vmatprep.subr.msk.bf16.mxu1 %vm3977_vm1, %v3829_v20  ;;  %v99_v32 = vld [vmem:[%s5349_s2 + $0x30] sm:$0xff]  ;;  %v3835_v33 = vpack.c.bf16 %v82_v29, %v81_v28  ;;  %v49_v34 = vld [vmem:[%s5350_s0 + $0x20] sm:$0xff]  ;;  %v50_v35 = vld [vmem:[%s5350_s0 + $0x28] sm:$0xff] }
   0xa   :  { %136 = vperm.xlu1 %3876, %v98_v23   ;;  %v102_v36 = vld [vmem:[%s5349_s2 + $0x48] sm:$0xff]  ;;  %v101_v37 = vld [vmem:[%s5349_s2 + $0x40] sm:$0xff]  ;;  %v67_v38 = vld [vmem:[%s5350_s0 + $0xb0] sm:$0xff]  ;;  %v3790_v40 = vpack.c.bf16 %v50_v35, %v49_v34 }
   0xb   :  { %v68_v39 = vld [vmem:[%s5350_s0 + $0xb8] sm:$0xff]  ;;  %v83_v41 = vld [vmem:[%s5350_s0 + $0x130] sm:$0xff]  ;;  %v106_v49 = vld [vmem:[%s5349_s2 + $0x68] sm:$0xff] }
   0xc   :  { %131 = vperm.xlu0 %3875, %v97_v24   ;;  %v84_v42 = vld [vmem:[%s5350_s0 + $0x138] sm:$0xff]  ;;  %v3793_v44 = vpack.c.bf16 %v68_v39, %v67_v38  ;;  %v103_v45 = vld [vmem:[%s5349_s2 + $0x50] sm:$0xff]  ;;  %v105_v50 = vld [vmem:[%s5349_s2 + $0x60] sm:$0xff] }
   0xd   :  { %v104_v43 = vld [vmem:[%s5349_s2 + $0x58] sm:$0xff]  ;;  %v3841_v46 = vpack.c.bf16 %v84_v42, %v83_v41  ;;  %v51_v47 = vld [vmem:[%s5350_s0 + $0x30] sm:$0xff]  ;;  %v69_v51 = vld [vmem:[%s5350_s0 + $0xc0] sm:$0xff] }
   0xe   :  { %146 = vperm.xlu1 %3876, %v100_v30   ;;  %v52_v48 = vld [vmem:[%s5350_s0 + $0x38] sm:$0xff]  ;;  %v70_v52 = vld [vmem:[%s5350_s0 + $0xc8] sm:$0xff]  ;;  %v85_v54 = vld [vmem:[%s5350_s0 + $0x140] sm:$0xff] }
   0xf   :  { %3786 = vmatpush3.bf16.xpose.msk.msra.mxu0 %vm3977_vm1, %v3784_v27  ;;  %3834 = vmatpush3.bf16.xpose.msk.msra.mxu1 %vm3977_vm1, %v3829_v20  ;;  %v3796_v53 = vpack.c.bf16 %v52_v48, %v51_v47  ;;  %v86_v55 = vld [vmem:[%s5350_s0 + $0x148] sm:$0xff]  ;;  %v108_v56 = vld [vmem:[%s5349_s2 + $0x78] sm:$0xff]  ;;  %v3799_v57 = vpack.c.bf16 %v70_v52, %v69_v51  ;;  %v4129_v58 = vld [vmem:[%s5351_s1] sm:$0xff] }
  0x10   :  { %141 = vperm.xlu0 %3875, %v99_v32   ;;  %3789 = vmatprep.subr.msk.bf16.mxu0 %vm3977_vm1, %v3787_v31  ;;  %v107_v59 = vld [vmem:[%s5349_s2 + $0x70] sm:$0xff]  ;;  %v3847_v60 = vpack.c.bf16 %v86_v55, %v85_v54  ;;  %v53_v61 = vld [vmem:[%s5350_s0 + $0x40] sm:$0xff]  ;;  %v54_v62 = vld [vmem:[%s5350_s0 + $0x48] sm:$0xff] }
  0x11   :  { %3837 = vmatprep.subr.msk.bf16.mxu1 %vm3977_vm1, %v3835_v33  ;;  %3386 = vmatprep.mubr.msk.f32.mxu0 %vm189_vm0, %v4129_v58  ;;  %v777_v63 = vld [vmem:[%s5352_s4 + $0x8] sm:$0xff]  ;;  %v776_v1 = vld [vmem:[%s5352_s4] sm:$0xff]  ;;  %v71_v2 = vld [vmem:[%s5350_s0 + $0xd0] sm:$0xff]  ;;  %v3802_v4 = vpack.c.bf16 %v54_v62, %v53_v61 }
  0x12   :  { %156 = vperm.xlu1 %3876, %v102_v36   ;;  %3571 = vmatprep.mubr.msk.f32.mxu1 %vm189_vm0, %v4129_v58  ;;  %v72_v3 = vld [vmem:[%s5350_s0 + $0xd8] sm:$0xff]  ;;  %v87_v6 = vld [vmem:[%s5350_s0 + $0x150] sm:$0xff]  ;;  %v781_v14 = vld [vmem:[%s5352_s4 + $0x28] sm:$0xff] }
  0x13   :  { %v88_v7 = vld [vmem:[%s5350_s0 + $0x158] sm:$0xff]  ;;  %v3805_v9 = vpack.c.bf16 %v72_v3, %v71_v2  ;;  %v778_v10 = vld [vmem:[%s5352_s4 + $0x10] sm:$0xff]  ;;  %v780_v15 = vld [vmem:[%s5352_s4 + $0x20] sm:$0xff] }
  0x14   :  { %151 = vperm.xlu0 %3875, %v101_v37   ;;  %v779_v8 = vld [vmem:[%s5352_s4 + $0x18] sm:$0xff]  ;;  %v3853_v11 = vpack.c.bf16 %v88_v7, %v87_v6  ;;  %v55_v12 = vld [vmem:[%s5350_s0 + $0x50] sm:$0xff]  ;;  %v73_v16 = vld [vmem:[%s5350_s0 + $0xe0] sm:$0xff] }
  0x15   :  { %v56_v13 = vld [vmem:[%s5350_s0 + $0x58] sm:$0xff]  ;;  %v74_v17 = vld [vmem:[%s5350_s0 + $0xe8] sm:$0xff]  ;;  %v89_v19 = vld [vmem:[%s5350_s0 + $0x160] sm:$0xff] }
  0x16   :  { %166 = vperm.xlu1 %3876, %v104_v43   ;;  %v3808_v18 = vpack.c.bf16 %v56_v13, %v55_v12  ;;  %v90_v20 = vld [vmem:[%s5350_s0 + $0x168] sm:$0xff]  ;;  %v783_v21 = vld [vmem:[%s5352_s4 + $0x38] sm:$0xff]  ;;  %v3811_v22 = vpack.c.bf16 %v74_v17, %v73_v16  ;;  %v782_v23 = vld [vmem:[%s5352_s4 + $0x30] sm:$0xff]  ;;  %v12_v43 = vstv %s5353_s6 }
  0x17   :  { %3792 = vmatpush3.bf16.xpose.msk.msra.mxu0 %vm3977_vm1, %v3790_v40  ;;  %3840 = vmatpush3.bf16.xpose.msk.msra.mxu1 %vm3977_vm1, %v3835_v33  ;;  %v3859_v24 = vpack.c.bf16 %v90_v20, %v89_v19  ;;  %v57_v25 = vld [vmem:[%s5350_s0 + $0x60] sm:$0xff]  ;;  %v58_v26 = vld [vmem:[%s5350_s0 + $0x68] sm:$0xff]  ;;  %v75_v29 = vld [vmem:[%s5350_s0 + $0xf0] sm:$0xff]  ;;  %13 = vst [vmem:[#allocation2] sm:$0x1] %v12_v43 }
  0x18   :  { %161 = vperm.xlu0 %3875, %v103_v45   ;;  %3795 = vmatprep.subr.msk.bf16.mxu0 %vm3977_vm1, %v3793_v44  ;;  %v785_v27 = vld [vmem:[%s5352_s4 + $0x48] sm:$0xff]  ;;  %v784_v28 = vld [vmem:[%s5352_s4 + $0x40] sm:$0xff]  ;;  %v76_v30 = vld [vmem:[%s5350_s0 + $0xf8] sm:$0xff]  ;;  %v3814_v31 = vpack.c.bf16 %v58_v26, %v57_v25 }
  0x19   :  { %3843 = vmatprep.subr.msk.bf16.mxu1 %vm3977_vm1, %v3841_v46  ;;  %v91_v32 = vld [vmem:[%s5350_s0 + $0x170] sm:$0xff]  ;;  %v92_v33 = vld [vmem:[%s5350_s0 + $0x178] sm:$0xff]  ;;  %v3817_v35 = vpack.c.bf16 %v76_v30, %v75_v29  ;;  %v789_v40 = vld [vmem:[%s5352_s4 + $0x68] sm:$0xff] }
  0x1a   :  { %176 = vperm.xlu1 %3876, %v106_v49   ;;  %v787_v34 = vld [vmem:[%s5352_s4 + $0x58] sm:$0xff]  ;;  %v786_v36 = vld [vmem:[%s5352_s4 + $0x50] sm:$0xff]  ;;  %v3865_v37 = vpack.c.bf16 %v92_v33, %v91_v32  ;;  %v788_v41 = vld [vmem:[%s5352_s4 + $0x60] sm:$0xff] }
  0x1b   :  { %v59_v38 = vld [vmem:[%s5350_s0 + $0x70] sm:$0xff]  ;;  %v60_v39 = vld [vmem:[%s5350_s0 + $0x78] sm:$0xff]  ;;  %v3210_v47 = vld [vmem:[%s5352_s4 + $0x80] sm:$0xff] }
  0x1c   :  { %171 = vperm.xlu0 %3875, %v105_v50   ;;  %v3820_v42 = vpack.c.bf16 %v60_v39, %v59_v38  ;;  %v791_v44 = vld [vmem:[%s5352_s4 + $0x78] sm:$0xff]  ;;  %v790_v45 = vld [vmem:[%s5352_s4 + $0x70] sm:$0xff]  ;;  %v30_v48 = vld [vmem:[%s5351_s1 + $0x8] sm:$0xff] }
  0x1d   :  { %v3213_v5 = vld [vmem:[%s5352_s4 + $0x98] sm:$0xff]  ;;  %v31_v49 = vld [vmem:[%s5351_s1 + $0x10] sm:$0xff]  ;;  %v3215_v52 = vld [vmem:[%s5352_s4 + $0xa8] sm:$0xff] }
  0x1e   :  { %186 = vperm.xlu1 %3876, %v108_v56   ;;  %v3212_v50 = vld [vmem:[%s5352_s4 + $0x90] sm:$0xff]  ;;  %v32_v51 = vld [vmem:[%s5351_s1 + $0x18] sm:$0xff]  ;;  %v3214_v54 = vld [vmem:[%s5352_s4 + $0xa0] sm:$0xff] }
  0x1f   :  { %3798 = vmatpush3.bf16.xpose.msk.msra.mxu0 %vm3977_vm1, %v3796_v53  ;;  %3846 = vmatpush3.bf16.xpose.msk.msra.mxu1 %vm3977_vm1, %v3841_v46  ;;  %v3211_v46 = vld [vmem:[%s5352_s4 + $0x88] sm:$0xff]  ;;  %v33_v53 = vld [vmem:[%s5351_s1 + $0x20] sm:$0xff]  ;;  %v3217_v56 = vld [vmem:[%s5352_s4 + $0xb8] sm:$0xff] }
  0x20   :  { %181 = vperm.xlu0 %3875, %v107_v59   ;;  %3801 = vmatprep.subr.msk.bf16.mxu0 %vm3977_vm1, %v3799_v57  ;;  %v34_v55 = vld [vmem:[%s5351_s1 + $0x28] sm:$0xff]  ;;  %v35_v57 = vld [vmem:[%s5351_s1 + $0x30] sm:$0xff]  ;;  %v36_v59 = vld [vmem:[%s5351_s1 + $0x38] sm:$0xff] }
  0x21   :  { %3849 = vmatprep.subr.msk.bf16.mxu1 %vm3977_vm1, %v3847_v60  ;;  %v37_v61 = vld [vmem:[%s5351_s1 + $0x40] sm:$0xff]  ;;  %v39_v2 = vld [vmem:[%s5351_s1 + $0x50] sm:$0xff]  ;;  %v3223_v6 = vld [vmem:[%s5352_s4 + $0xe8] sm:$0xff] }
  0x22   :  { %799 = vperm.xlu1 %3876, %v777_v63   ;;  %v3218_v62 = vld [vmem:[%s5352_s4 + $0xc0] sm:$0xff]  ;;  %v38_v63 = vld [vmem:[%s5351_s1 + $0x48] sm:$0xff]  ;;  %v3220_v3 = vld [vmem:[%s5352_s4 + $0xd0] sm:$0xff] }
  0x23   :  { %v41_v7 = vld [vmem:[%s5351_s1 + $0x60] sm:$0xff]  ;;  %v3224_v12 = vld [vmem:[%s5352_s4 + $0xf0] sm:$0xff]  ;;  %v44_v13 = vld [vmem:[%s5351_s1 + $0x78] sm:$0xff] }
  0x24   :  { %794 = vperm.xlu0 %3875, %v776_v1   ;;  %v3221_v1 = vld [vmem:[%s5352_s4 + $0xd8] sm:$0xff]  ;;  %v3252_v17 = vld [vmem:[%s5352_s4 + $0x110] sm:$0xff]  ;;  %v3254_v19 = vld [vmem:[%s5352_s4 + $0x120] sm:$0xff] }
  0x25   :  { %v3253_v16 = vld [vmem:[%s5352_s4 + $0x118] sm:$0xff]  ;;  %v3260_v25 = vld [vmem:[%s5352_s4 + $0x150] sm:$0xff]  ;;  %v3263_v26 = vld [vmem:[%s5352_s4 + $0x168] sm:$0xff] }
  0x26   :  { %809 = vperm.xlu1 %3876, %v779_v8   ;;  %v3222_v8 = vld [vmem:[%s5352_s4 + $0xe0] sm:$0xff]  ;;  %v3257_v20 = vld [vmem:[%s5352_s4 + $0x138] sm:$0xff]  ;;  %v3264_v29 = vld [vmem:[%s5352_s4 + $0x170] sm:$0xff] }
  0x27   :  { %3804 = vmatpush3.bf16.xpose.msk.msra.mxu0 %vm3977_vm1, %v3802_v4  ;;  %3852 = vmatpush3.bf16.xpose.msk.msra.mxu1 %vm3977_vm1, %v3847_v60  ;;  %v3219_v60 = vld [vmem:[%s5352_s4 + $0xc8] sm:$0xff]  ;;  %v40_v4 = vld [vmem:[%s5351_s1 + $0x58] sm:$0xff]  ;;  %v3292_v33 = vld [vmem:[%s5352_s4 + $0x190] sm:$0xff] }
  0x28   :  { %804 = vperm.xlu0 %3875, %v778_v10   ;;  %3807 = vmatprep.subr.msk.bf16.mxu0 %vm3977_vm1, %v3805_v9  ;;  %v42_v9 = vld [vmem:[%s5351_s1 + $0x68] sm:$0xff]  ;;  %v3225_v10 = vld [vmem:[%s5352_s4 + $0xf8] sm:$0xff]  ;;  %v3298_v39 = vld [vmem:[%s5352_s4 + $0x1c0] sm:$0xff] }
  0x29   :  { %3855 = vmatprep.subr.msk.bf16.mxu1 %vm3977_vm1, %v3853_v11  ;;  %v3291_v30 = vld [vmem:[%s5352_s4 + $0x188] sm:$0xff]  ;;  %v3293_v32 = vld [vmem:[%s5352_s4 + $0x198] sm:$0xff]  ;;  %v3302_v43 = vld [vmem:[%s5352_s4 + $0x1e0] sm:$0xff] }
  0x2a   :  { %819 = vperm.xlu1 %3876, %v781_v14   ;;  %v3251_v14 = vld [vmem:[%s5352_s4 + $0x108] sm:$0xff] }
  0x2b   :  { %v3299_v38 = vld [vmem:[%s5352_s4 + $0x1c8] sm:$0xff] }
  0x2c   :  { %814 = vperm.xlu0 %3875, %v780_v15   ;;  %v3250_v15 = vld [vmem:[%s5352_s4 + $0x100] sm:$0xff] }
  0x2e   :  { %829 = vperm.xlu1 %3876, %v783_v21   ;;  %v3256_v21 = vld [vmem:[%s5352_s4 + $0x130] sm:$0xff] }
  0x2f   :  { %3810 = vmatpush3.bf16.xpose.msk.msra.mxu0 %vm3977_vm1, %v3808_v18  ;;  %3858 = vmatpush3.bf16.xpose.msk.msra.mxu1 %vm3977_vm1, %v3853_v11  ;;  %v43_v11 = vld [vmem:[%s5351_s1 + $0x70] sm:$0xff]  ;;  %v3255_v18 = vld [vmem:[%s5352_s4 + $0x128] sm:$0xff] }
  0x30   :  { %824 = vperm.xlu0 %3875, %v782_v23   ;;  %3813 = vmatprep.subr.msk.bf16.mxu0 %vm3977_vm1, %v3811_v22  ;;  %v3259_v22 = vld [vmem:[%s5352_s4 + $0x148] sm:$0xff]  ;;  %v3258_v23 = vld [vmem:[%s5352_s4 + $0x140] sm:$0xff] }
  0x31   :  { %3861 = vmatprep.subr.msk.bf16.mxu1 %vm3977_vm1, %v3859_v24 }
  0x32   :  { %839 = vperm.xlu1 %3876, %v785_v27   ;;  %v3262_v27 = vld [vmem:[%s5352_s4 + $0x160] sm:$0xff] }
  0x34   :  { %834 = vperm.xlu0 %3875, %v784_v28   ;;  %v3265_v28 = vld [vmem:[%s5352_s4 + $0x178] sm:$0xff] }
  0x36   :  { %849 = vperm.xlu1 %3876, %v787_v34   ;;  %v3295_v34 = vld [vmem:[%s5352_s4 + $0x1a8] sm:$0xff] }
  0x37   :  { %3816 = vmatpush3.bf16.xpose.msk.msra.mxu0 %vm3977_vm1, %v3814_v31  ;;  %3864 = vmatpush3.bf16.xpose.msk.msra.mxu1 %vm3977_vm1, %v3859_v24  ;;  %v3261_v24 = vld [vmem:[%s5352_s4 + $0x158] sm:$0xff]  ;;  %v3290_v31 = vld [vmem:[%s5352_s4 + $0x180] sm:$0xff] }
  0x38   :  { %844 = vperm.xlu0 %3875, %v786_v36   ;;  %3819 = vmatprep.subr.msk.bf16.mxu0 %vm3977_vm1, %v3817_v35  ;;  %v3294_v35 = vld [vmem:[%s5352_s4 + $0x1a0] sm:$0xff]  ;;  %v3297_v36 = vld [vmem:[%s5352_s4 + $0x1b8] sm:$0xff] }
  0x39   :  { %3867 = vmatprep.subr.msk.bf16.mxu1 %vm3977_vm1, %v3865_v37 }
  0x3a   :  { %859 = vperm.xlu1 %3876, %v789_v40   ;;  %v3301_v40 = vld [vmem:[%s5352_s4 + $0x1d8] sm:$0xff] }
  0x3c   :  { %854 = vperm.xlu0 %3875, %v788_v41   ;;  %v3300_v41 = vld [vmem:[%s5352_s4 + $0x1d0] sm:$0xff] }
  0x3e   :  { %869 = vperm.xlu1 %3876, %v791_v44   ;;  %v3305_v44 = vld [vmem:[%s5352_s4 + $0x1f8] sm:$0xff] }
  0x3f   :  { %3822 = vmatpush3.bf16.xpose.msk.msra.mxu0 %vm3977_vm1, %v3820_v42  ;;  %3870 = vmatpush3.bf16.xpose.msk.msra.mxu1 %vm3977_vm1, %v3865_v37  ;;  %v3296_v37 = vld [vmem:[%s5352_s4 + $0x1b0] sm:$0xff]  ;;  %v3303_v42 = vld [vmem:[%s5352_s4 + $0x1e8] sm:$0xff] }
  0x40   :  { %864 = vperm.xlu0 %3875, %v790_v45   ;;  %v3304_v45 = vld [vmem:[%s5352_s4 + $0x1f0] sm:$0xff] }
  0x42   :  { %1243 = vperm.xlu1 %3876, %v3211_v46   ;;  %v3331_v46 = vld [vmem:[%s5352_s4 + $0x208] sm:$0xff] }
  0x44   :  { %1238 = vperm.xlu0 %3875, %v3210_v47   ;;  %v3330_v47 = vld [vmem:[%s5352_s4 + $0x200] sm:$0xff] }
  0x46   :  { %3387 = vmatmul.mubr.msk.f32.vlgmr.msra.gmra.mrb[0].mxu0 %vm189_vm0, %v4129_v58  ;;  %3572 = vmatmul.mubr.msk.f32.vlgmr.msra.gmra.mrb[0].mxu1 %vm189_vm0, %v30_v48  ;;  %v3216_v58 = vld [vmem:[%s5352_s4 + $0xb0] sm:$0xff] }
  0x47   :  { %3388 = vmatprep.mubr.msk.f32.mxu0 %vm189_vm0, %v30_v48  ;;  %1253 = vperm.xlu1 %3876, %v3213_v5   ;;  %v3332_v5 = vld [vmem:[%s5352_s4 + $0x210] sm:$0xff] }
  0x48   :  { %3574 = vmatprep.mubr.msk.f32.mxu1 %vm189_vm0, %v31_v49  ;;  %1248 = vperm.xlu0 %3875, %v3212_v50   ;;  %v3334_v50 = vld [vmem:[%s5352_s4 + $0x220] sm:$0xff] }
  0x4a   :  { %3389 = vmatmul.mubr.msk.f32.gmra.mrb[2].mxu0 %vm189_vm0, %v30_v48  ;;  %3575 = vmatmul.mubr.msk.f32.gmra.mrb[2].mxu1 %vm189_vm0, %v32_v51  ;;  %v3333_v48 = vld [vmem:[%s5352_s4 + $0x218] sm:$0xff] }
  0x4b   :  { %3390 = vmatprep.mubr.msk.f32.mxu0 %vm189_vm0, %v31_v49  ;;  %1263 = vperm.xlu1 %3876, %v3215_v52   ;;  %v3336_v52 = vld [vmem:[%s5352_s4 + $0x230] sm:$0xff] }
  0x4c   :  { %3577 = vmatprep.mubr.msk.f32.mxu1 %vm189_vm0, %v33_v53  ;;  %1258 = vperm.xlu0 %3875, %v3214_v54   ;;  %v3338_v54 = vld [vmem:[%s5352_s4 + $0x240] sm:$0xff] }
  0x4e   :  { %3391 = vmatmul.mubr.msk.f32.gmra.mrb[4].mxu0 %vm189_vm0, %v31_v49  ;;  %3578 = vmatmul.mubr.msk.f32.gmra.mrb[4].mxu1 %vm189_vm0, %v34_v55  ;;  %v3335_v49 = vld [vmem:[%s5352_s4 + $0x228] sm:$0xff] }
  0x4f   :  { %3392 = vmatprep.mubr.msk.f32.mxu0 %vm189_vm0, %v32_v51  ;;  %1273 = vperm.xlu1 %3876, %v3217_v56   ;;  %v3340_v56 = vld [vmem:[%s5352_s4 + $0x250] sm:$0xff] }
  0x50   :  { %3580 = vmatprep.mubr.msk.f32.mxu1 %vm189_vm0, %v35_v57  ;;  %1268 = vperm.xlu0 %3875, %v3216_v58   ;;  %v3342_v58 = vld [vmem:[%s5352_s4 + $0x260] sm:$0xff] }
  0x52   :  { %3393 = vmatmul.mubr.msk.f32.gmra.mrb[6].mxu0 %vm189_vm0, %v32_v51  ;;  %3581 = vmatmul.mubr.msk.f32.gmra.mrb[6].mxu1 %vm189_vm0, %v36_v59  ;;  %v3337_v51 = vld [vmem:[%s5352_s4 + $0x238] sm:$0xff] }
  0x53   :  { %3394 = vmatprep.mubr.msk.f32.mxu0 %vm189_vm0, %v33_v53  ;;  %1283 = vperm.xlu1 %3876, %v3219_v60   ;;  %v3344_v60 = vld [vmem:[%s5352_s4 + $0x270] sm:$0xff] }
  0x54   :  { %3583 = vmatprep.mubr.msk.f32.mxu1 %vm189_vm0, %v37_v61  ;;  %1278 = vperm.xlu0 %3875, %v3218_v62   ;;  %v2979_v62 = vld [vmem:[#allocation2] sm:$0x1] }
  0x56   :  { %3395 = vmatmul.mubr.msk.f32.gmra.mrb[8].mxu0 %vm189_vm0, %v33_v53  ;;  %3584 = vmatmul.mubr.msk.f32.gmra.mrb[8].mxu1 %vm189_vm0, %v38_v63  ;;  %v3339_v53 = vld [vmem:[%s5352_s4 + $0x248] sm:$0xff] }
  0x57   :  { %3396 = vmatprep.mubr.msk.f32.mxu0 %vm189_vm0, %v34_v55  ;;  %1293 = vperm.xlu1 %3876, %v3221_v1  }
  0x58   :  { %3586 = vmatprep.mubr.msk.f32.mxu1 %vm189_vm0, %v39_v2  ;;  %1288 = vperm.xlu0 %3875, %v3220_v3  }
  0x5a   :  { %3397 = vmatmul.mubr.msk.f32.gmra.mrb[10].mxu0 %vm189_vm0, %v34_v55  ;;  %3587 = vmatmul.mubr.msk.f32.gmra.mrb[10].mxu1 %vm189_vm0, %v40_v4  ;;  %v3341_v55 = vld [vmem:[%s5352_s4 + $0x258] sm:$0xff] }
  0x5b   :  { %3398 = vmatprep.mubr.msk.f32.mxu0 %vm189_vm0, %v35_v57  ;;  %1303 = vperm.xlu1 %3876, %v3223_v6  }
  0x5c   :  { %3589 = vmatprep.mubr.msk.f32.mxu1 %vm189_vm0, %v41_v7  ;;  %1298 = vperm.xlu0 %3875, %v3222_v8  }
  0x5e   :  { %3399 = vmatmul.mubr.msk.f32.gmra.mrb[12].mxu0 %vm189_vm0, %v35_v57  ;;  %3590 = vmatmul.mubr.msk.f32.gmra.mrb[12].mxu1 %vm189_vm0, %v42_v9  ;;  %v3343_v57 = vld [vmem:[%s5352_s4 + $0x268] sm:$0xff] }
  0x5f   :  { %3400 = vmatprep.mubr.msk.f32.mxu0 %vm189_vm0, %v36_v59  ;;  %1313 = vperm.xlu1 %3876, %v3225_v10  }
  0x60   :  { %3592 = vmatprep.mubr.msk.f32.mxu1 %vm189_vm0, %v43_v11  ;;  %1308 = vperm.xlu0 %3875, %v3224_v12  }
  0x62   :  { %3401 = vmatmul.mubr.msk.f32.gmra.mrb[14].mxu0 %vm189_vm0, %v36_v59  ;;  %3593 = vmatmul.mubr.msk.f32.gmra.mrb[14].mxu1 %vm189_vm0, %v44_v13  ;;  %v3345_v59 = vld [vmem:[%s5352_s4 + $0x278] sm:$0xff] }
  0x63   :  { %3402 = vmatprep.mubr.msk.f32.mxu0 %vm189_vm0, %v37_v61  ;;  %1687 = vperm.xlu1 %3876, %v3251_v14  }
  0x64   :  { %952 = vmatprep.mubr.bf16.mxu1 %v3917_v0  ;;  %1682 = vperm.xlu0 %3875, %v3250_v15  }
  0x66   :  { %3403 = vmatmul.mubr.msk.f32.gmra.mrb[16].mxu0 %vm189_vm0, %v37_v61  ;;  %v4573_v61 = vld [vmem:[%s5354_s3] sm:$0xff]  }
  0x67   :  { %3404 = vmatprep.mubr.msk.f32.mxu0 %vm189_vm0, %v38_v63  ;;  %1697 = vperm.xlu1 %3876, %v3253_v16  }
  0x68   :  { %1692 = vperm.xlu0 %3875, %v3252_v17  }
  0x6a   :  { %3405 = vmatmul.mubr.msk.f32.gmra.mrb[18].mxu0 %vm189_vm0, %v38_v63 }
  0x6b   :  { %3406 = vmatprep.mubr.msk.f32.mxu0 %vm189_vm0, %v39_v2  ;;  %1707 = vperm.xlu1 %3876, %v3255_v18  }
  0x6c   :  { %1702 = vperm.xlu0 %3875, %v3254_v19  }
  0x6e   :  { %3407 = vmatmul.mubr.msk.f32.gmra.mrb[20].mxu0 %vm189_vm0, %v39_v2 }
  0x6f   :  { %3408 = vmatprep.mubr.msk.f32.mxu0 %vm189_vm0, %v40_v4  ;;  %1717 = vperm.xlu1 %3876, %v3257_v20  }
  0x70   :  { %1712 = vperm.xlu0 %3875, %v3256_v21  }
  0x72   :  { %3409 = vmatmul.mubr.msk.f32.gmra.mrb[22].mxu0 %vm189_vm0, %v40_v4 }
  0x73   :  { %3410 = vmatprep.mubr.msk.f32.mxu0 %vm189_vm0, %v41_v7  ;;  %1727 = vperm.xlu1 %3876, %v3259_v22  }
  0x74   :  { %1722 = vperm.xlu0 %3875, %v3258_v23  }
  0x76   :  { %3411 = vmatmul.mubr.msk.f32.gmra.mrb[24].mxu0 %vm189_vm0, %v41_v7 }
  0x77   :  { %3412 = vmatprep.mubr.msk.f32.mxu0 %vm189_vm0, %v42_v9  ;;  %1737 = vperm.xlu1 %3876, %v3261_v24  }
  0x78   :  { %1732 = vperm.xlu0 %3875, %v3260_v25  }
  0x7a   :  { %3413 = vmatmul.mubr.msk.f32.gmra.mrb[26].mxu0 %vm189_vm0, %v42_v9 }
  0x7b   :  { %3414 = vmatprep.mubr.msk.f32.mxu0 %vm189_vm0, %v43_v11  ;;  %1747 = vperm.xlu1 %3876, %v3263_v26  }
  0x7c   :  { %1742 = vperm.xlu0 %3875, %v3262_v27  }
  0x7e   :  { %3415 = vmatmul.mubr.msk.f32.gmra.mrb[28].mxu0 %vm189_vm0, %v43_v11 }
  0x7f   :  { %3416 = vmatprep.mubr.msk.f32.mxu0 %vm189_vm0, %v44_v13  ;;  %1757 = vperm.xlu1 %3876, %v3265_v28  }
  0x80   :  { %1752 = vperm.xlu0 %3875, %v3264_v29  }
  0x81   :  { %v122_v63 = vpop.permute.xlu1 %121  ;;  %v112_v1 = vpop.permute.xlu0 %111 }
  0x82   :  { %3417 = vmatmul.mubr.msk.f32.gmra.mrb[30].mxu0 %vm189_vm0, %v44_v13 }
  0x83   :  { %2131 = vperm.xlu1 %3876, %v3291_v30   ;;  %3611 = vmatprep.mubr.bf16.mxu0 %v4573_v61 }
  0x84   :  { %2126 = vperm.xlu0 %3875, %v3290_v31  }
  0x85   :  { %v127_v2 = vpop.permute.xlu1 %126 }
  0x87   :  { %2141 = vperm.xlu1 %3876, %v3293_v32   ;;  %v117_v3 = vpop.permute.xlu0 %116 }
  0x88   :  { %2136 = vperm.xlu0 %3875, %v3292_v33  }
  0x89   :  { %v4576_v4 = vpop.permute.xlu1 %136 }
  0x8b   :  { %2151 = vperm.xlu1 %3876, %v3295_v34   ;;  %v4578_v6 = vpop.permute.xlu0 %131 }
  0x8c   :  { %2146 = vperm.xlu0 %3875, %v3294_v35  }
  0x8d   :  { %v4580_v14 = vpop.permute.xlu1 %146 }
  0x8f   :  { %2161 = vperm.xlu1 %3876, %v3297_v36   ;;  %v4582_v22 = vpop.permute.xlu0 %141 }
  0x90   :  { %2156 = vperm.xlu0 %3875, %v3296_v37  }
  0x93   :  { %2171 = vperm.xlu1 %3876, %v3299_v38   ;;  %v4584_v38 = vpop.permute.xlu1 %156 }
  0x94   :  { %2166 = vperm.xlu0 %3875, %v3298_v39  }
  0x97   :  { %2181 = vperm.xlu1 %3876, %v3301_v40  }
  0x98   :  { %2176 = vperm.xlu0 %3875, %v3300_v41  }
  0x9b   :  { %2191 = vperm.xlu1 %3876, %v3303_v42  }
  0x9c   :  { %2186 = vperm.xlu0 %3875, %v3302_v43  }
  0x9f   :  { %2201 = vperm.xlu1 %3876, %v3305_v44  }
  0xa0   :  { %2196 = vperm.xlu0 %3875, %v3304_v45   ;;  %v4588_v45 = vpop.permute.xlu0 %151 }
  0xa3   :  { %2575 = vperm.xlu1 %3876, %v3331_v46  }
  0xa4   :  { %2570 = vperm.xlu0 %3875, %v3330_v47  }
  0xa7   :  { %2585 = vperm.xlu1 %3876, %v3333_v48  }
  0xa8   :  { %2580 = vperm.xlu0 %3875, %v3332_v5  }
  0xab   :  { %2595 = vperm.xlu1 %3876, %v3335_v49  }
  0xac   :  { %2590 = vperm.xlu0 %3875, %v3334_v50  }
  0xaf   :  { %2605 = vperm.xlu1 %3876, %v3337_v51  }
  0xb0   :  { %2600 = vperm.xlu0 %3875, %v3336_v52  }
  0xb3   :  { %2615 = vperm.xlu1 %3876, %v3339_v53  }
  0xb4   :  { %2610 = vperm.xlu0 %3875, %v3338_v54  }
  0xb7   :  { %2625 = vperm.xlu1 %3876, %v3341_v55  }
  0xb8   :  { %2620 = vperm.xlu0 %3875, %v3340_v56  }
  0xbb   :  { %2635 = vperm.xlu1 %3876, %v3343_v57  }
  0xbc   :  { %2630 = vperm.xlu0 %3875, %v3342_v58  }
  0xbf   :  { %2645 = vperm.xlu1 %3876, %v3345_v59   ;;  %v4592_v59 = vpop.permute.xlu1 %166 }
  0xc0   :  { %2640 = vperm.xlu0 %3875, %v3344_v60  }
  0xc4   :  { %2982 = vperm.xlu0 %3875, %v2979_v62  }
 0x119   :  { %v448_v7 = vpop.f32.mrb[0].mxu0  ;;  %v3573_v8 = vpop.f32.mrb[0].mxu1 }
 0x11a   :  { %v450_v9 = vpop.f32.mrb[1].mxu0  ;;  %v615_v10 = vadd.f32 %v3573_v8, %v117_v3  ;;  %v609_v11 = vpop.f32.mrb[1].mxu1  ;;  %v449_v12 = vadd.f32 %v448_v7, %v112_v1 }
 0x11b   :  { %v610_v13 = vadd.f32 %v609_v11, %v112_v1  ;;  %v451_v16 = vadd.f32 %v450_v9, %v112_v1 }
 0x11c   :  { %v693_v15 = vmax.f32 %v615_v10, 0.0  ;;  %v688_v26 = vmax.f32 %v449_v12, 0.0  ;;  %v4594_v10 = vpop.permute.xlu0 %161 }
 0x11d   :  { %v454_v17 = vpop.f32.mrb[2].mxu0  ;;  %v690_v18 = vmax.f32 %v610_v13, 0.0  ;;  %v3576_v20 = vpop.f32.mrb[2].mxu1  ;;  %v689_v30 = vmax.f32 %v451_v16, 0.0 }
 0x11e   :  { %v455_v19 = vadd.f32 %v454_v17, %v117_v3  ;;  %v456_v21 = vpop.f32.mrb[3].mxu0  ;;  %v625_v23 = vadd.f32 %v3576_v20, %v127_v2  ;;  %v619_v25 = vpop.f32.mrb[3].mxu1 }
 0x11f   :  { %v457_v24 = vadd.f32 %v456_v21, %v117_v3  ;;  %v738_v27 = vpack.c.bf16 %v693_v15, %v690_v18  ;;  %v620_v29 = vadd.f32 %v619_v25, %v122_v63  ;;  %v4601_v25 = vpop.permute.xlu1 %176 }
 0x120   :  { %v691_v28 = vmax.f32 %v455_v19, 0.0  ;;  %v699_v31 = vmax.f32 %v625_v23, 0.0 }
 0x121   :  { %v692_v32 = vmax.f32 %v457_v24, 0.0  ;;  %v460_v33 = vpop.f32.mrb[4].mxu0  ;;  %v696_v35 = vmax.f32 %v620_v29, 0.0  ;;  %v3579_v36 = vpop.f32.mrb[4].mxu1  ;;  %3595 = vmatprep.subr.bf16.mxu0 %v738_v27 }
 0x122   :  { %v736_v34 = vpack.c.bf16 %v691_v28, %v688_v26  ;;  %v462_v37 = vpop.f32.mrb[5].mxu0  ;;  %v635_v40 = vadd.f32 %v3579_v36, %v4576_v4  ;;  %v629_v41 = vpop.f32.mrb[5].mxu1  ;;  %3596 = vmatpush3.bf16.msra.mxu0 %v738_v27  ;;  %v461_v43 = vadd.f32 %v460_v33, %v122_v63 }
 0x123   :  { %v737_v39 = vpack.c.bf16 %v692_v32, %v689_v30  ;;  %v741_v42 = vpack.c.bf16 %v699_v31, %v696_v35  ;;  %v630_v44 = vadd.f32 %v629_v41, %v4578_v6  ;;  %v463_v47 = vadd.f32 %v462_v37, %v122_v63  ;;  %v4606_v32 = vpop.permute.xlu0 %171 }
 0x124   :  { %v705_v46 = vmax.f32 %v635_v40, 0.0  ;;  %v694_v55 = vmax.f32 %v461_v43, 0.0 }
 0x125   :  { %v466_v48 = vpop.f32.mrb[6].mxu0  ;;  %920 = vmatprep.subr.bf16.mxu1 %v737_v39  ;;  %v702_v5 = vmax.f32 %v630_v44, 0.0  ;;  %v3582_v50 = vpop.f32.mrb[6].mxu1  ;;  %3597 = vmatprep.subr.bf16.mxu0 %v741_v42  ;;  %v695_v60 = vmax.f32 %v463_v47, 0.0 }
 0x126   :  { %v467_v49 = vadd.f32 %v466_v48, %v127_v2  ;;  %v468_v51 = vpop.f32.mrb[7].mxu0  ;;  %921 = vmatpush1.bf16.msra.mxu1 %v736_v34  ;;  %v645_v52 = vadd.f32 %v3582_v50, %v4580_v14  ;;  %v639_v54 = vpop.f32.mrb[7].mxu1  ;;  %3598 = vmatpush3.bf16.msra.mxu0 %v741_v42 }
 0x127   :  { %v469_v53 = vadd.f32 %v468_v51, %v127_v2  ;;  %v744_v56 = vpack.c.bf16 %v705_v46, %v702_v5  ;;  %v640_v58 = vadd.f32 %v639_v54, %v4582_v22  ;;  %v4611_v48 = vpop.permute.xlu1 %186 }
 0x128   :  { %v697_v57 = vmax.f32 %v467_v49, 0.0  ;;  %v711_v62 = vmax.f32 %v645_v52, 0.0 }
 0x129   :  { %v698_v63 = vmax.f32 %v469_v53, 0.0  ;;  %v472_v1 = vpop.f32.mrb[8].mxu0  ;;  %v708_v7 = vmax.f32 %v640_v58, 0.0  ;;  %v3585_v8 = vpop.f32.mrb[8].mxu1  ;;  %3599 = vmatprep.subr.bf16.mxu0 %v744_v56 }
 0x12a   :  { %v739_v3 = vpack.c.bf16 %v697_v57, %v694_v55  ;;  %v474_v9 = vpop.f32.mrb[9].mxu0  ;;  %v655_v11 = vadd.f32 %v3585_v8, %v4584_v38  ;;  %v649_v12 = vpop.f32.mrb[9].mxu1  ;;  %3600 = vmatpush3.bf16.msra.mxu0 %v744_v56  ;;  %v473_v15 = vadd.f32 %v472_v1, %v4578_v6 }
 0x12b   :  { %v740_v2 = vpack.c.bf16 %v698_v63, %v695_v60  ;;  %v747_v13 = vpack.c.bf16 %v711_v62, %v708_v7  ;;  %v650_v16 = vadd.f32 %v649_v12, %v4588_v45  ;;  %v475_v18 = vadd.f32 %v474_v9, %v4578_v6  ;;  %v4615_v55 = vpop.permute.xlu0 %181 }
 0x12c   :  { %v717_v17 = vmax.f32 %v655_v11, 0.0  ;;  %v700_v29 = vmax.f32 %v473_v15, 0.0 }
 0x12d   :  { %v478_v19 = vpop.f32.mrb[10].mxu0  ;;  %922 = vmatprep.subr.bf16.mxu1 %v740_v2  ;;  %v714_v20 = vmax.f32 %v650_v16, 0.0  ;;  %v3588_v23 = vpop.f32.mrb[10].mxu1  ;;  %3601 = vmatprep.subr.bf16.mxu0 %v747_v13  ;;  %v701_v33 = vmax.f32 %v475_v18, 0.0 }
 0x12e   :  { %v479_v21 = vadd.f32 %v478_v19, %v4576_v4  ;;  %v480_v24 = vpop.f32.mrb[11].mxu0  ;;  %923 = vmatpush1.bf16.msra.mxu1 %v739_v3  ;;  %v665_v26 = vadd.f32 %v3588_v23, %v4592_v59  ;;  %v659_v28 = vpop.f32.mrb[11].mxu1  ;;  %3602 = vmatpush3.bf16.msra.mxu0 %v747_v13  ;;  %v4626_v19 = vld [vmem:[%s5354_s3 + $0x8] sm:$0xff]  }
 0x12f   :  { %v481_v27 = vadd.f32 %v480_v24, %v4576_v4  ;;  %v750_v30 = vpack.c.bf16 %v717_v17, %v714_v20  ;;  %v660_v31 = vadd.f32 %v659_v28, %v4594_v10 }
 0x130   :  { %v703_v6 = vmax.f32 %v479_v21, 0.0  ;;  %v723_v34 = vmax.f32 %v665_v26, 0.0  ;;  %v4632_v21 = vld [vmem:[%s5354_s3 + $0x10] sm:$0xff]  }
 0x131   :  { %v704_v35 = vmax.f32 %v481_v27, 0.0  ;;  %v484_v36 = vpop.f32.mrb[12].mxu0  ;;  %v720_v39 = vmax.f32 %v660_v31, 0.0  ;;  %v3591_v40 = vpop.f32.mrb[12].mxu1  ;;  %3603 = vmatprep.subr.bf16.mxu0 %v750_v30 }
 0x132   :  { %v742_v37 = vpack.c.bf16 %v703_v6, %v700_v29  ;;  %v486_v41 = vpop.f32.mrb[13].mxu0  ;;  %v675_v4 = vadd.f32 %v3591_v40, %v4601_v25  ;;  %v669_v43 = vpop.f32.mrb[13].mxu1  ;;  %3604 = vmatpush3.bf16.msra.mxu0 %v750_v30  ;;  %v485_v46 = vadd.f32 %v484_v36, %v4582_v22 }
 0x133   :  { %v743_v42 = vpack.c.bf16 %v704_v35, %v701_v33  ;;  %v753_v44 = vpack.c.bf16 %v723_v34, %v720_v39  ;;  %v670_v47 = vadd.f32 %v669_v43, %v4606_v32  ;;  %v487_v49 = vadd.f32 %v486_v41, %v4582_v22  ;;  %v3880_v35 = vld [vmem:[%s5354_s3 + $0x18] sm:$0xff]  }
 0x134   :  { %v729_v5 = vmax.f32 %v675_v4, 0.0  ;;  %v706_v60 = vmax.f32 %v485_v46, 0.0 }
 0x135   :  { %v490_v50 = vpop.f32.mrb[14].mxu0  ;;  %924 = vmatprep.subr.bf16.mxu1 %v743_v42  ;;  %v726_v51 = vmax.f32 %v670_v47, 0.0  ;;  %v3594_v53 = vpop.f32.mrb[14].mxu1  ;;  %3605 = vmatprep.subr.bf16.mxu0 %v753_v44  ;;  %v707_v1 = vmax.f32 %v487_v49, 0.0 }
 0x136   :  { %v491_v52 = vadd.f32 %v490_v50, %v4580_v14  ;;  %v492_v54 = vpop.f32.mrb[15].mxu0  ;;  %925 = vmatpush1.bf16.msra.mxu1 %v742_v37  ;;  %v685_v56 = vadd.f32 %v3594_v53, %v4611_v48  ;;  %v679_v58 = vpop.f32.mrb[15].mxu1  ;;  %3606 = vmatpush3.bf16.msra.mxu0 %v753_v44  ;;  %v3881_v37 = vld [vmem:[%s5354_s3 + $0x20] sm:$0xff]   ;;  %v3882_v50 = vld [vmem:[%s5354_s3 + $0x28] sm:$0xff]  }
 0x137   :  { %v493_v57 = vadd.f32 %v492_v54, %v4580_v14  ;;  %v756_v62 = vpack.c.bf16 %v729_v5, %v726_v51  ;;  %v680_v63 = vadd.f32 %v679_v58, %v4615_v55 }
 0x138   :  { %v709_v22 = vmax.f32 %v491_v52, 0.0  ;;  %v735_v3 = vmax.f32 %v685_v56, 0.0  ;;  %v3883_v52 = vld [vmem:[%s5354_s3 + $0x30] sm:$0xff]  }
 0x139   :  { %v710_v7 = vmax.f32 %v493_v57, 0.0  ;;  %v496_v8 = vpop.f32.mrb[16].mxu0  ;;  %v732_v2 = vmax.f32 %v680_v63, 0.0  ;;  %3607 = vmatprep.subr.bf16.mxu0 %v756_v62 }
 0x13a   :  { %v745_v9 = vpack.c.bf16 %v709_v22, %v706_v60  ;;  %v498_v11 = vpop.f32.mrb[17].mxu0  ;;  %3608 = vmatpush3.bf16.msra.mxu0 %v756_v62  ;;  %v497_v14 = vadd.f32 %v496_v8, %v4588_v45 }
 0x13b   :  { %v746_v12 = vpack.c.bf16 %v710_v7, %v707_v1  ;;  %v759_v13 = vpack.c.bf16 %v735_v3, %v732_v2  ;;  %v499_v15 = vadd.f32 %v498_v11, %v4588_v45  ;;  %v3884_v7 = vld [vmem:[%s5354_s3 + $0x38] sm:$0xff]  }
 0x13c   :  { %v712_v45 = vmax.f32 %v497_v14, 0.0 }
 0x13d   :  { %v502_v16 = vpop.f32.mrb[18].mxu0  ;;  %926 = vmatprep.subr.bf16.mxu1 %v746_v12  ;;  %3609 = vmatprep.subr.bf16.mxu0 %v759_v13  ;;  %v713_v24 = vmax.f32 %v499_v15, 0.0 }
 0x13e   :  { %v503_v17 = vadd.f32 %v502_v16, %v4584_v38  ;;  %v504_v18 = vpop.f32.mrb[19].mxu0  ;;  %927 = vmatpush1.bf16.msra.mxu1 %v745_v9  ;;  %3610 = vmatpush3.bf16.msra.mxu0 %v759_v13 }
 0x13f   :  { %v505_v20 = vadd.f32 %v504_v18, %v4584_v38 }
 0x140   :  { %v715_v23 = vmax.f32 %v503_v17, 0.0 }
 0x141   :  { %v716_v26 = vmax.f32 %v505_v20, 0.0  ;;  %v508_v27 = vpop.f32.mrb[20].mxu0  ;;  %3612 = vmatmul.mubr.bf16.vlgmr.msra.gmra.mrb[32].mxu0 %v4626_v19 }
 0x142   :  { %v748_v28 = vpack.c.bf16 %v715_v23, %v712_v45  ;;  %v510_v29 = vpop.f32.mrb[21].mxu0  ;;  %3615 = vmatprep.mubr.bf16.mxu0 %v4632_v21  ;;  %v509_v38 = vadd.f32 %v508_v27, %v4594_v10 }
 0x143   :  { %v749_v30 = vpack.c.bf16 %v716_v26, %v713_v24  ;;  %v511_v6 = vadd.f32 %v510_v29, %v4594_v10 }
 0x144   :  { %v718_v39 = vmax.f32 %v509_v38, 0.0 }
 0x145   :  { %v514_v31 = vpop.f32.mrb[22].mxu0  ;;  %928 = vmatprep.subr.bf16.mxu1 %v749_v30  ;;  %v719_v41 = vmax.f32 %v511_v6, 0.0 }
 0x146   :  { %v515_v33 = vadd.f32 %v514_v31, %v4592_v59  ;;  %v516_v34 = vpop.f32.mrb[23].mxu0  ;;  %929 = vmatpush1.bf16.msra.mxu1 %v748_v28 }
 0x147   :  { %v517_v36 = vadd.f32 %v516_v34, %v4592_v59 }
 0x148   :  { %v721_v40 = vmax.f32 %v515_v33, 0.0 }
 0x149   :  { %v722_v10 = vmax.f32 %v517_v36, 0.0  ;;  %v520_v42 = vpop.f32.mrb[24].mxu0  ;;  %3616 = vmatmul.mubr.bf16.gmra.mrb[36].mxu0 %v3880_v35 }
 0x14a   :  { %v751_v4 = vpack.c.bf16 %v721_v40, %v718_v39  ;;  %v522_v43 = vpop.f32.mrb[25].mxu0  ;;  %3619 = vmatprep.mubr.bf16.mxu0 %v3881_v37  ;;  %v521_v46 = vadd.f32 %v520_v42, %v4606_v32 }
 0x14b   :  { %v752_v44 = vpack.c.bf16 %v722_v10, %v719_v41  ;;  %v523_v47 = vadd.f32 %v522_v43, %v4606_v32 }
 0x14c   :  { %v724_v53 = vmax.f32 %v521_v46, 0.0 }
 0x14d   :  { %v526_v5 = vpop.f32.mrb[26].mxu0  ;;  %930 = vmatprep.subr.bf16.mxu1 %v752_v44  ;;  %v725_v56 = vmax.f32 %v523_v47, 0.0 }
 0x14e   :  { %v527_v59 = vadd.f32 %v526_v5, %v4601_v25  ;;  %v528_v49 = vpop.f32.mrb[27].mxu0  ;;  %931 = vmatpush1.bf16.msra.mxu1 %v751_v4 }
 0x14f   :  { %v529_v51 = vadd.f32 %v528_v49, %v4601_v25 }
 0x150   :  { %v727_v54 = vmax.f32 %v527_v59, 0.0 }
 0x151   :  { %v728_v32 = vmax.f32 %v529_v51, 0.0  ;;  %v532_v57 = vpop.f32.mrb[28].mxu0  ;;  %3620 = vmatmul.mubr.bf16.gmra.mrb[40].mxu0 %v3882_v50 }
 0x152   :  { %v754_v58 = vpack.c.bf16 %v727_v54, %v724_v53  ;;  %v534_v60 = vpop.f32.mrb[29].mxu0  ;;  %3623 = vmatprep.mubr.bf16.mxu0 %v3883_v52  ;;  %v533_v22 = vadd.f32 %v532_v57, %v4615_v55 }
 0x153   :  { %v755_v62 = vpack.c.bf16 %v728_v32, %v725_v56  ;;  %v535_v63 = vadd.f32 %v534_v60, %v4615_v55  ;;  %v4682_v55 = vpop.permute.xlu1 %799 }
 0x154   :  { %v730_v9 = vmax.f32 %v533_v22, 0.0 }
 0x155   :  { %v538_v1 = vpop.f32.mrb[30].mxu0  ;;  %932 = vmatprep.subr.bf16.mxu1 %v755_v62  ;;  %v731_v11 = vmax.f32 %v535_v63, 0.0 }
 0x156   :  { %v539_v25 = vadd.f32 %v538_v1, %v4611_v48  ;;  %v540_v3 = vpop.f32.mrb[31].mxu0  ;;  %933 = vmatpush1.bf16.msra.mxu1 %v754_v58 }
 0x157   :  { %v541_v8 = vadd.f32 %v540_v3, %v4611_v48  ;;  %v4680_v48 = vpop.permute.xlu0 %794  ;;  %v4686_v16 = vpop.permute.xlu1 %809 }
 0x158   :  { %v733_v2 = vmax.f32 %v539_v25, 0.0 }
 0x159   :  { %v734_v12 = vmax.f32 %v541_v8, 0.0  ;;  %3624 = vmatmul.mubr.bf16.gmra.mrb[44].mxu0 %v3884_v7 }
 0x15a   :  { %v757_v13 = vpack.c.bf16 %v733_v2, %v730_v9  ;;  %1396 = vmatprep.mubr.bf16.mxu0 %v3917_v0 }
 0x15b   :  { %v758_v14 = vpack.c.bf16 %v734_v12, %v731_v11  ;;  %v4684_v15 = vpop.permute.xlu0 %804  ;;  %v4690_v18 = vpop.permute.xlu1 %819 }
 0x15d   :  { %934 = vmatprep.subr.bf16.mxu1 %v758_v14 }
 0x15e   :  { %935 = vmatpush1.bf16.msra.mxu1 %v757_v13 }
 0x15f   :  { %v4688_v17 = vpop.permute.xlu0 %814  ;;  %v4695_v23 = vpop.permute.xlu1 %829 }
 0x161   :  { %953 = vmatmul.mubr.bf16.vlgmr.msra.gmra.mrb[16].mxu1 %v4573_v61  ;;  %v4677_v61 = vld [vmem:[%s5354_s3 + $0x40] sm:$0xff]  }
 0x162   :  { %962 = vmatprep.mubr.bf16.mxu1 %v3917_v0 }
 0x169   :  { %963 = vmatmul.mubr.bf16.gmra.mrb[20].mxu1 %v4626_v19  ;;  %v4692_v19 = vpop.permute.xlu0 %824 }
 0x16a   :  { %972 = vmatprep.mubr.bf16.mxu1 %v3917_v0 }
 0x16d   :  { %v4700_v6 = vpop.permute.xlu0 %834 }
 0x171   :  { %973 = vmatmul.mubr.bf16.gmra.mrb[24].mxu1 %v4632_v21  ;;  %v4707_v43 = vpop.permute.xlu0 %844 }
 0x172   :  { %982 = vmatprep.mubr.bf16.mxu1 %v3917_v0 }
 0x175   :  { %v4713_v56 = vpop.permute.xlu0 %854 }
 0x179   :  { %983 = vmatmul.mubr.bf16.gmra.mrb[28].mxu1 %v3880_v35  ;;  %v4702_v35 = vpop.permute.xlu1 %839  ;;  %v4720_v8 = vpop.permute.xlu0 %864 }
 0x17a   :  { %992 = vmatprep.mubr.bf16.mxu1 %v3917_v0 }
 0x17d   :  { %v4710_v5 = vpop.permute.xlu1 %849 }
 0x181   :  { %993 = vmatmul.mubr.bf16.gmra.mrb[32].mxu1 %v3881_v37  ;;  %v4717_v62 = vpop.permute.xlu1 %859 }
 0x182   :  { %1002 = vmatprep.mubr.bf16.mxu1 %v3917_v0 }
 0x185   :  { %v4723_v13 = vpop.permute.xlu1 %869 }
 0x189   :  { %1003 = vmatmul.mubr.bf16.gmra.mrb[36].mxu1 %v3882_v50 }
 0x18a   :  { %1012 = vmatprep.mubr.bf16.mxu1 %v3917_v0 }
 0x191   :  { %1013 = vmatmul.mubr.bf16.gmra.mrb[40].mxu1 %v3883_v52 }
 0x192   :  { %1022 = vmatprep.mubr.bf16.mxu1 %v3917_v0 }
 0x199   :  { %1023 = vmatmul.mubr.bf16.gmra.mrb[44].mxu1 %v3884_v7 }
 0x19a   :  { %3643 = vmatprep.mubr.bf16.mxu1 %v4677_v61 }
 0x214   :  { %v3613_v20 = vpop.f32.mrb[32].mxu0 }
 0x215   :  { %v1076_v21 = vadd.f32 %v3613_v20, %v4684_v15  ;;  %v1067_v45 = vpop.f32.mrb[33].mxu0 }
 0x216   :  { %v1068_v24 = vadd.f32 %v1067_v45, %v4680_v48  ;;  %v3614_v26 = vpop.f32.mrb[34].mxu0 }
 0x217   :  { %v1079_v27 = vadd.f32 %v3614_v26, %v4686_v16  ;;  %v1070_v28 = vpop.f32.mrb[35].mxu0  ;;  %v1138_v30 = vmax.f32 %v1076_v21, 0.0 }
 0x218   :  { %v1071_v29 = vadd.f32 %v1070_v28, %v4682_v55  ;;  %v1132_v31 = vmax.f32 %v1068_v24, 0.0 }
 0x219   :  { %v1141_v38 = vmax.f32 %v1079_v27, 0.0 }
 0x21a   :  { %v1135_v33 = vmax.f32 %v1071_v29, 0.0 }
 0x21b   :  { %v1183_v34 = vpack.c.bf16 %v1141_v38, %v1138_v30 }
 0x21c   :  { %v1180_v36 = vpack.c.bf16 %v1135_v33, %v1132_v31  ;;  %v3617_v37 = vpop.f32.mrb[36].mxu0 }
 0x21d   :  { %v1092_v39 = vadd.f32 %v3617_v37, %v4692_v19  ;;  %v1083_v40 = vpop.f32.mrb[37].mxu0 }
 0x21e   :  { %v1084_v41 = vadd.f32 %v1083_v40, %v4688_v17  ;;  %v3618_v10 = vpop.f32.mrb[38].mxu0  ;;  %3627 = vmatprep.subr.bf16.mxu1 %v1180_v36 }
 0x21f   :  { %v1095_v42 = vadd.f32 %v3618_v10, %v4695_v23  ;;  %v1086_v4 = vpop.f32.mrb[39].mxu0  ;;  %3628 = vmatpush3.bf16.msra.mxu1 %v1180_v36  ;;  %v1150_v46 = vmax.f32 %v1092_v39, 0.0 }
 0x220   :  { %v1087_v44 = vadd.f32 %v1086_v4, %v4690_v18  ;;  %3629 = vmatprep.subr.bf16.mxu1 %v1183_v34  ;;  %v1144_v59 = vmax.f32 %v1084_v41, 0.0 }
 0x221   :  { %v1153_v47 = vmax.f32 %v1095_v42, 0.0 }
 0x222   :  { %v1147_v49 = vmax.f32 %v1087_v44, 0.0 }
 0x223   :  { %v1189_v50 = vpack.c.bf16 %v1153_v47, %v1150_v46  ;;  %3630 = vmatpush3.bf16.msra.mxu1 %v1183_v34  ;;  %v4735_v47 = vld [vmem:[%s5354_s3 + $0x48] sm:$0xff]  }
 0x224   :  { %v1186_v51 = vpack.c.bf16 %v1147_v49, %v1144_v59  ;;  %v3621_v52 = vpop.f32.mrb[40].mxu0  ;;  %v4740_v49 = vld [vmem:[%s5354_s3 + $0x50] sm:$0xff]  }
 0x225   :  { %v1108_v53 = vadd.f32 %v3621_v52, %v4707_v43  ;;  %v1099_v54 = vpop.f32.mrb[41].mxu0 }
 0x226   :  { %v1100_v32 = vadd.f32 %v1099_v54, %v4700_v6  ;;  %v3622_v57 = vpop.f32.mrb[42].mxu0  ;;  %3631 = vmatprep.subr.bf16.mxu1 %v1186_v51 }
 0x227   :  { %v1111_v58 = vadd.f32 %v3622_v57, %v4710_v5  ;;  %v1102_v60 = vpop.f32.mrb[43].mxu0  ;;  %3632 = vmatpush3.bf16.msra.mxu1 %v1186_v51  ;;  %v1162_v63 = vmax.f32 %v1108_v53, 0.0 }
 0x228   :  { %v1103_v22 = vadd.f32 %v1102_v60, %v4702_v35  ;;  %3633 = vmatprep.subr.bf16.mxu1 %v1189_v50  ;;  %v1156_v25 = vmax.f32 %v1100_v32, 0.0 }
 0x229   :  { %v1165_v1 = vmax.f32 %v1111_v58, 0.0 }
 0x22a   :  { %v1159_v3 = vmax.f32 %v1103_v22, 0.0 }
 0x22b   :  { %v1195_v7 = vpack.c.bf16 %v1165_v1, %v1162_v63  ;;  %3634 = vmatpush3.bf16.msra.mxu1 %v1189_v50 }
 0x22c   :  { %v1192_v9 = vpack.c.bf16 %v1159_v3, %v1156_v25  ;;  %v3625_v2 = vpop.f32.mrb[44].mxu0  ;;  %v4756_v3 = vld [vmem:[%s5354_s3 + $0x60] sm:$0xff]  }
 0x22d   :  { %v1124_v11 = vadd.f32 %v3625_v2, %v4720_v8  ;;  %v1115_v12 = vpop.f32.mrb[45].mxu0 }
 0x22e   :  { %v1116_v14 = vadd.f32 %v1115_v12, %v4713_v56  ;;  %v3626_v20 = vpop.f32.mrb[46].mxu0  ;;  %3635 = vmatprep.subr.bf16.mxu1 %v1192_v9 }
 0x22f   :  { %v1127_v21 = vadd.f32 %v3626_v20, %v4723_v13  ;;  %v1118_v45 = vpop.f32.mrb[47].mxu0  ;;  %3636 = vmatpush3.bf16.msra.mxu1 %v1192_v9  ;;  %v1174_v26 = vmax.f32 %v1124_v11, 0.0 }
 0x230   :  { %v1119_v24 = vadd.f32 %v1118_v45, %v4717_v62  ;;  %3637 = vmatprep.subr.bf16.mxu1 %v1195_v7  ;;  %v1168_v28 = vmax.f32 %v1116_v14, 0.0 }
 0x231   :  { %v1177_v27 = vmax.f32 %v1127_v21, 0.0 }
 0x232   :  { %v1171_v29 = vmax.f32 %v1119_v24, 0.0 }
 0x233   :  { %v1201_v30 = vpack.c.bf16 %v1177_v27, %v1174_v26  ;;  %3638 = vmatpush3.bf16.msra.mxu1 %v1195_v7 }
 0x234   :  { %v954_v38 = vpop.f32.mrb[16].mxu1  ;;  %v1198_v31 = vpack.c.bf16 %v1171_v29, %v1168_v28  ;;  %v4772_v29 = vld [vmem:[%s5354_s3 + $0x70] sm:$0xff]  }
 0x235   :  { %v955_v33 = vadd.f32 %v954_v38, %v4680_v48  ;;  %v956_v34 = vpop.f32.mrb[17].mxu1 }
 0x236   :  { %v957_v36 = vadd.f32 %v956_v34, %v4680_v48  ;;  %v958_v37 = vpop.f32.mrb[18].mxu1  ;;  %3639 = vmatprep.subr.bf16.mxu1 %v1198_v31 }
 0x237   :  { %v959_v39 = vadd.f32 %v958_v37, %v4682_v55  ;;  %v960_v40 = vpop.f32.mrb[19].mxu1  ;;  %3640 = vmatpush3.bf16.msra.mxu1 %v1198_v31  ;;  %v1130_v10 = vmax.f32 %v955_v33, 0.0 }
 0x238   :  { %v961_v41 = vadd.f32 %v960_v40, %v4682_v55  ;;  %3641 = vmatprep.subr.bf16.mxu1 %v1201_v30  ;;  %v1131_v4 = vmax.f32 %v957_v36, 0.0 }
 0x239   :  { %v1133_v42 = vmax.f32 %v959_v39, 0.0 }
 0x23a   :  { %v1134_v44 = vmax.f32 %v961_v41, 0.0 }
 0x23b   :  { %v1178_v46 = vpack.c.bf16 %v1133_v42, %v1130_v10  ;;  %3642 = vmatpush3.bf16.msra.mxu1 %v1201_v30 }
 0x23c   :  { %v1179_v48 = vpack.c.bf16 %v1134_v44, %v1131_v4  ;;  %v964_v59 = vpop.f32.mrb[20].mxu1 }
 0x23d   :  { %v965_v55 = vadd.f32 %v964_v59, %v4684_v15  ;;  %v966_v50 = vpop.f32.mrb[21].mxu1 }
 0x23e   :  { %v967_v51 = vadd.f32 %v966_v50, %v4684_v15  ;;  %v968_v52 = vpop.f32.mrb[22].mxu1  ;;  %1364 = vmatprep.subr.bf16.mxu0 %v1179_v48  ;;  %3644 = vmatmul.mubr.bf16.vlgmr.msra.gmra.mrb[48].mxu1 %v4735_v47  ;;  %v4751_v15 = vld [vmem:[%s5354_s3 + $0x58] sm:$0xff]  }
 0x23f   :  { %v969_v53 = vadd.f32 %v968_v52, %v4686_v16  ;;  %v970_v54 = vpop.f32.mrb[23].mxu1  ;;  %1365 = vmatpush1.bf16.msra.mxu0 %v1178_v46  ;;  %3647 = vmatprep.mubr.bf16.mxu1 %v4740_v49  ;;  %v1136_v57 = vmax.f32 %v965_v55, 0.0 }
 0x240   :  { %v971_v32 = vadd.f32 %v970_v54, %v4686_v16  ;;  %v1137_v60 = vmax.f32 %v967_v51, 0.0 }
 0x241   :  { %v1139_v58 = vmax.f32 %v969_v53, 0.0 }
 0x242   :  { %v1140_v22 = vmax.f32 %v971_v32, 0.0 }
 0x243   :  { %v1181_v63 = vpack.c.bf16 %v1139_v58, %v1136_v57 }
 0x244   :  { %v1182_v1 = vpack.c.bf16 %v1140_v22, %v1137_v60  ;;  %v974_v25 = vpop.f32.mrb[24].mxu1 }
 0x245   :  { %v975_v16 = vadd.f32 %v974_v25, %v4688_v17  ;;  %v976_v7 = vpop.f32.mrb[25].mxu1 }
 0x246   :  { %v977_v9 = vadd.f32 %v976_v7, %v4688_v17  ;;  %v978_v2 = vpop.f32.mrb[26].mxu1  ;;  %1366 = vmatprep.subr.bf16.mxu0 %v1182_v1  ;;  %3648 = vmatmul.mubr.bf16.gmra.mrb[52].mxu1 %v4751_v15  ;;  %v4767_v17 = vld [vmem:[%s5354_s3 + $0x68] sm:$0xff]  }
 0x247   :  { %v979_v11 = vadd.f32 %v978_v2, %v4690_v18  ;;  %v980_v12 = vpop.f32.mrb[27].mxu1  ;;  %1367 = vmatpush1.bf16.msra.mxu0 %v1181_v63  ;;  %3651 = vmatprep.mubr.bf16.mxu1 %v4756_v3  ;;  %v1142_v20 = vmax.f32 %v975_v16, 0.0 }
 0x248   :  { %v981_v14 = vadd.f32 %v980_v12, %v4690_v18  ;;  %v1143_v45 = vmax.f32 %v977_v9, 0.0 }
 0x249   :  { %v1145_v21 = vmax.f32 %v979_v11, 0.0 }
 0x24a   :  { %v1146_v24 = vmax.f32 %v981_v14, 0.0 }
 0x24b   :  { %v1184_v26 = vpack.c.bf16 %v1145_v21, %v1142_v20 }
 0x24c   :  { %v1185_v27 = vpack.c.bf16 %v1146_v24, %v1143_v45  ;;  %v984_v28 = vpop.f32.mrb[28].mxu1 }
 0x24d   :  { %v985_v18 = vadd.f32 %v984_v28, %v4692_v19  ;;  %v986_v30 = vpop.f32.mrb[29].mxu1 }
 0x24e   :  { %v987_v38 = vadd.f32 %v986_v30, %v4692_v19  ;;  %v988_v31 = vpop.f32.mrb[30].mxu1  ;;  %1368 = vmatprep.subr.bf16.mxu0 %v1185_v27  ;;  %3652 = vmatmul.mubr.bf16.gmra.mrb[56].mxu1 %v4767_v17  ;;  %v4783_v19 = vld [vmem:[%s5354_s3 + $0x78] sm:$0xff]  }
 0x24f   :  { %v989_v33 = vadd.f32 %v988_v31, %v4695_v23  ;;  %v990_v34 = vpop.f32.mrb[31].mxu1  ;;  %1369 = vmatpush1.bf16.msra.mxu0 %v1184_v26  ;;  %3655 = vmatprep.mubr.bf16.mxu1 %v4772_v29  ;;  %v1148_v37 = vmax.f32 %v985_v18, 0.0 }
 0x250   :  { %v991_v36 = vadd.f32 %v990_v34, %v4695_v23  ;;  %v1149_v40 = vmax.f32 %v987_v38, 0.0 }
 0x251   :  { %v1151_v39 = vmax.f32 %v989_v33, 0.0 }
 0x252   :  { %v1152_v41 = vmax.f32 %v991_v36, 0.0 }
 0x253   :  { %v1187_v10 = vpack.c.bf16 %v1151_v39, %v1148_v37 }
 0x254   :  { %v1188_v42 = vpack.c.bf16 %v1152_v41, %v1149_v40  ;;  %v994_v4 = vpop.f32.mrb[32].mxu1 }
 0x255   :  { %v995_v44 = vadd.f32 %v994_v4, %v4700_v6  ;;  %v996_v46 = vpop.f32.mrb[33].mxu1 }
 0x256   :  { %v997_v48 = vadd.f32 %v996_v46, %v4700_v6  ;;  %v998_v23 = vpop.f32.mrb[34].mxu1  ;;  %1370 = vmatprep.subr.bf16.mxu0 %v1188_v42  ;;  %3656 = vmatmul.mubr.bf16.gmra.mrb[60].mxu1 %v4783_v19 }
 0x257   :  { %v999_v59 = vadd.f32 %v998_v23, %v4702_v35  ;;  %v1000_v55 = vpop.f32.mrb[35].mxu1  ;;  %1371 = vmatpush1.bf16.msra.mxu0 %v1187_v10  ;;  %1840 = vmatprep.mubr.bf16.mxu1 %v3917_v0  ;;  %v1154_v51 = vmax.f32 %v995_v44, 0.0 }
 0x258   :  { %v1001_v50 = vadd.f32 %v1000_v55, %v4702_v35  ;;  %v1155_v53 = vmax.f32 %v997_v48, 0.0 }
 0x259   :  { %v1157_v52 = vmax.f32 %v999_v59, 0.0 }
 0x25a   :  { %v1158_v54 = vmax.f32 %v1001_v50, 0.0 }
 0x25b   :  { %v1190_v32 = vpack.c.bf16 %v1157_v52, %v1154_v51 }
 0x25c   :  { %v1191_v57 = vpack.c.bf16 %v1158_v54, %v1155_v53  ;;  %v1004_v58 = vpop.f32.mrb[36].mxu1 }
 0x25d   :  { %v1005_v6 = vadd.f32 %v1004_v58, %v4707_v43  ;;  %v1006_v60 = vpop.f32.mrb[37].mxu1 }
 0x25e   :  { %v1007_v22 = vadd.f32 %v1006_v60, %v4707_v43  ;;  %v1008_v63 = vpop.f32.mrb[38].mxu1  ;;  %1372 = vmatprep.subr.bf16.mxu0 %v1191_v57 }
 0x25f   :  { %v1009_v1 = vadd.f32 %v1008_v63, %v4710_v5  ;;  %v1010_v25 = vpop.f32.mrb[39].mxu1  ;;  %1373 = vmatpush1.bf16.msra.mxu0 %v1190_v32  ;;  %v1160_v16 = vmax.f32 %v1005_v6, 0.0 }
 0x260   :  { %v1011_v35 = vadd.f32 %v1010_v25, %v4710_v5  ;;  %v1161_v9 = vmax.f32 %v1007_v22, 0.0 }
 0x261   :  { %v1163_v7 = vmax.f32 %v1009_v1, 0.0 }
 0x262   :  { %v1164_v2 = vmax.f32 %v1011_v35, 0.0 }
 0x263   :  { %v1193_v11 = vpack.c.bf16 %v1163_v7, %v1160_v16 }
 0x264   :  { %v1194_v12 = vpack.c.bf16 %v1164_v2, %v1161_v9  ;;  %v1014_v14 = vpop.f32.mrb[40].mxu1 }
 0x265   :  { %v1015_v20 = vadd.f32 %v1014_v14, %v4713_v56  ;;  %v1016_v21 = vpop.f32.mrb[41].mxu1 }
 0x266   :  { %v1017_v43 = vadd.f32 %v1016_v21, %v4713_v56  ;;  %v1018_v45 = vpop.f32.mrb[42].mxu1  ;;  %1374 = vmatprep.subr.bf16.mxu0 %v1194_v12 }
 0x267   :  { %v1019_v24 = vadd.f32 %v1018_v45, %v4717_v62  ;;  %v1020_v26 = vpop.f32.mrb[43].mxu1  ;;  %1375 = vmatpush1.bf16.msra.mxu0 %v1193_v11  ;;  %v1166_v27 = vmax.f32 %v1015_v20, 0.0 }
 0x268   :  { %v1021_v5 = vadd.f32 %v1020_v26, %v4717_v62  ;;  %v1167_v18 = vmax.f32 %v1017_v43, 0.0 }
 0x269   :  { %v1169_v28 = vmax.f32 %v1019_v24, 0.0 }
 0x26a   :  { %v1170_v30 = vmax.f32 %v1021_v5, 0.0 }
 0x26b   :  { %v1196_v38 = vpack.c.bf16 %v1169_v28, %v1166_v27 }
 0x26c   :  { %v1197_v31 = vpack.c.bf16 %v1170_v30, %v1167_v18  ;;  %v1024_v33 = vpop.f32.mrb[44].mxu1 }
 0x26d   :  { %v1025_v34 = vadd.f32 %v1024_v33, %v4720_v8  ;;  %v1026_v36 = vpop.f32.mrb[45].mxu1 }
 0x26e   :  { %v1027_v56 = vadd.f32 %v1026_v36, %v4720_v8  ;;  %v1028_v37 = vpop.f32.mrb[46].mxu1  ;;  %1376 = vmatprep.subr.bf16.mxu0 %v1197_v31  ;;  %v4824_v8 = vpop.permute.xlu0 %1238 }
 0x26f   :  { %v1029_v39 = vadd.f32 %v1028_v37, %v4723_v13  ;;  %v1030_v40 = vpop.f32.mrb[47].mxu1  ;;  %1377 = vmatpush1.bf16.msra.mxu0 %v1196_v38  ;;  %v1172_v41 = vmax.f32 %v1025_v34, 0.0 }
 0x270   :  { %v1031_v62 = vadd.f32 %v1030_v40, %v4723_v13  ;;  %v1173_v42 = vmax.f32 %v1027_v56, 0.0  ;;  %v4826_v13 = vpop.permute.xlu1 %1243 }
 0x271   :  { %v1175_v10 = vmax.f32 %v1029_v39, 0.0 }
 0x272   :  { %v1176_v4 = vmax.f32 %v1031_v62, 0.0 }
 0x273   :  { %v1199_v44 = vpack.c.bf16 %v1175_v10, %v1172_v41 }
 0x274   :  { %v1200_v46 = vpack.c.bf16 %v1176_v4, %v1173_v42 }
 0x276   :  { %1378 = vmatprep.subr.bf16.mxu0 %v1200_v46 }
 0x277   :  { %1379 = vmatpush1.bf16.msra.mxu0 %v1199_v44 }
 0x27a   :  { %1397 = vmatmul.mubr.bf16.vlgmr.msra.gmra.mrb[48].mxu0 %v4677_v61  ;;  %v4821_v61 = vld [vmem:[%s5354_s3 + $0x80] sm:$0xff]  }
 0x27b   :  { %1406 = vmatprep.mubr.bf16.mxu0 %v3917_v0 }
 0x282   :  { %1407 = vmatmul.mubr.bf16.gmra.mrb[52].mxu0 %v4735_v47  ;;  %v4828_v47 = vpop.permute.xlu0 %1248 }
 0x283   :  { %1416 = vmatprep.mubr.bf16.mxu0 %v3917_v0 }
 0x28a   :  { %1417 = vmatmul.mubr.bf16.gmra.mrb[56].mxu0 %v4740_v49  ;;  %v4830_v49 = vpop.permute.xlu1 %1253 }
 0x28b   :  { %1426 = vmatprep.mubr.bf16.mxu0 %v3917_v0 }
 0x292   :  { %1427 = vmatmul.mubr.bf16.gmra.mrb[60].mxu0 %v4751_v15  ;;  %v4832_v15 = vpop.permute.xlu0 %1258 }
 0x293   :  { %1436 = vmatprep.mubr.bf16.mxu0 %v3917_v0 }
 0x29a   :  { %1437 = vmatmul.mubr.bf16.gmra.mrb[64].mxu0 %v4756_v3  ;;  %v4834_v3 = vpop.permute.xlu1 %1263 }
 0x29b   :  { %1446 = vmatprep.mubr.bf16.mxu0 %v3917_v0 }
 0x29e   :  { %v4839_v23 = vpop.permute.xlu1 %1273 }
 0x2a2   :  { %1447 = vmatmul.mubr.bf16.gmra.mrb[68].mxu0 %v4767_v17  ;;  %v4836_v17 = vpop.permute.xlu0 %1268  ;;  %v4846_v60 = vpop.permute.xlu1 %1283 }
 0x2a3   :  { %1456 = vmatprep.mubr.bf16.mxu0 %v3917_v0 }
 0x2a6   :  { %v4844_v32 = vpop.permute.xlu0 %1278  ;;  %v4854_v20 = vpop.permute.xlu1 %1293 }
 0x2aa   :  { %1457 = vmatmul.mubr.bf16.gmra.mrb[72].mxu0 %v4772_v29  ;;  %v4851_v2 = vpop.permute.xlu0 %1288  ;;  %v4861_v33 = vpop.permute.xlu1 %1303 }
 0x2ab   :  { %1466 = vmatprep.mubr.bf16.mxu0 %v3917_v0 }
 0x2ae   :  { %v4857_v28 = vpop.permute.xlu0 %1298  ;;  %v4867_v44 = vpop.permute.xlu1 %1313 }
 0x2b2   :  { %1467 = vmatmul.mubr.bf16.gmra.mrb[76].mxu0 %v4783_v19  ;;  %v4864_v62 = vpop.permute.xlu0 %1308 }
 0x2b3   :  { %3675 = vmatprep.mubr.bf16.mxu0 %v4821_v61 }
 0x311   :  { %v3645_v29 = vpop.f32.mrb[48].mxu1 }
 0x312   :  { %v1520_v19 = vadd.f32 %v3645_v29, %v4828_v47  ;;  %v1511_v48 = vpop.f32.mrb[49].mxu1 }
 0x313   :  { %v1512_v59 = vadd.f32 %v1511_v48, %v4824_v8  ;;  %v3646_v55 = vpop.f32.mrb[50].mxu1 }
 0x314   :  { %v1523_v50 = vadd.f32 %v3646_v55, %v4830_v49  ;;  %v1514_v51 = vpop.f32.mrb[51].mxu1  ;;  %v1582_v53 = vmax.f32 %v1520_v19, 0.0 }
 0x315   :  { %v1515_v52 = vadd.f32 %v1514_v51, %v4826_v13  ;;  %v1576_v57 = vmax.f32 %v1512_v59, 0.0 }
 0x316   :  { %v1585_v54 = vmax.f32 %v1523_v50, 0.0 }
 0x317   :  { %v1579_v58 = vmax.f32 %v1515_v52, 0.0 }
 0x318   :  { %v1627_v6 = vpack.c.bf16 %v1585_v54, %v1582_v53 }
 0x319   :  { %v1624_v22 = vpack.c.bf16 %v1579_v58, %v1576_v57  ;;  %v3649_v63 = vpop.f32.mrb[52].mxu1  ;;  %v4875_v57 = vld [vmem:[%s5354_s3 + $0x88] sm:$0xff]   ;;  %v4880_v58 = vld [vmem:[%s5354_s3 + $0x90] sm:$0xff]  }
 0x31a   :  { %v1536_v1 = vadd.f32 %v3649_v63, %v4836_v17  ;;  %v1527_v25 = vpop.f32.mrb[53].mxu1  ;;  %v4899_v63 = vld [vmem:[%s5354_s3 + $0xa8] sm:$0xff]  }
 0x31b   :  { %v1528_v35 = vadd.f32 %v1527_v25, %v4832_v15  ;;  %v3650_v16 = vpop.f32.mrb[54].mxu1  ;;  %3659 = vmatprep.subr.bf16.mxu0 %v1624_v22 }
 0x31c   :  { %v1539_v7 = vadd.f32 %v3650_v16, %v4839_v23  ;;  %v1530_v9 = vpop.f32.mrb[55].mxu1  ;;  %3660 = vmatpush3.bf16.msra.mxu0 %v1624_v22  ;;  %v1594_v12 = vmax.f32 %v1536_v1, 0.0  ;;  %v4892_v22 = vld [vmem:[%s5354_s3 + $0xa0] sm:$0xff]   ;;  %v4904_v1 = vld [vmem:[%s5354_s3 + $0xb0] sm:$0xff]  }
 0x31d   :  { %v1531_v11 = vadd.f32 %v1530_v9, %v4834_v3  ;;  %3661 = vmatprep.subr.bf16.mxu0 %v1627_v6  ;;  %v1588_v21 = vmax.f32 %v1528_v35, 0.0 }
 0x31e   :  { %v1597_v14 = vmax.f32 %v1539_v7, 0.0 }
 0x31f   :  { %v1591_v43 = vmax.f32 %v1531_v11, 0.0 }
 0x320   :  { %v1633_v45 = vpack.c.bf16 %v1597_v14, %v1594_v12  ;;  %3662 = vmatpush3.bf16.msra.mxu0 %v1627_v6  ;;  %v4887_v6 = vld [vmem:[%s5354_s3 + $0x98] sm:$0xff]  }
 0x321   :  { %v1630_v24 = vpack.c.bf16 %v1591_v43, %v1588_v21  ;;  %v3653_v26 = vpop.f32.mrb[56].mxu1  ;;  %v4914_v14 = vld [vmem:[%s5354_s3 + $0xb8] sm:$0xff]  }
 0x322   :  { %v1552_v5 = vadd.f32 %v3653_v26, %v4851_v2  ;;  %v1543_v27 = vpop.f32.mrb[57].mxu1 }
 0x323   :  { %v1544_v18 = vadd.f32 %v1543_v27, %v4844_v32  ;;  %v3654_v30 = vpop.f32.mrb[58].mxu1  ;;  %3663 = vmatprep.subr.bf16.mxu0 %v1630_v24 }
 0x324   :  { %v1555_v38 = vadd.f32 %v3654_v30, %v4854_v20  ;;  %v1546_v31 = vpop.f32.mrb[59].mxu1  ;;  %3664 = vmatpush3.bf16.msra.mxu0 %v1630_v24  ;;  %v1606_v36 = vmax.f32 %v1552_v5, 0.0 }
 0x325   :  { %v1547_v34 = vadd.f32 %v1546_v31, %v4846_v60  ;;  %3665 = vmatprep.subr.bf16.mxu0 %v1633_v45  ;;  %v1600_v37 = vmax.f32 %v1544_v18, 0.0 }
 0x326   :  { %v1609_v56 = vmax.f32 %v1555_v38, 0.0 }
 0x327   :  { %v1603_v39 = vmax.f32 %v1547_v34, 0.0 }
 0x328   :  { %v1639_v40 = vpack.c.bf16 %v1609_v56, %v1606_v36  ;;  %3666 = vmatpush3.bf16.msra.mxu0 %v1633_v45 }
 0x329   :  { %v1636_v41 = vpack.c.bf16 %v1603_v39, %v1600_v37  ;;  %v3657_v10 = vpop.f32.mrb[60].mxu1 }
 0x32a   :  { %v1568_v42 = vadd.f32 %v3657_v10, %v4864_v62  ;;  %v1559_v4 = vpop.f32.mrb[61].mxu1 }
 0x32b   :  { %v1560_v46 = vadd.f32 %v1559_v4, %v4857_v28  ;;  %v3658_v29 = vpop.f32.mrb[62].mxu1  ;;  %3667 = vmatprep.subr.bf16.mxu0 %v1636_v41 }
 0x32c   :  { %v1571_v19 = vadd.f32 %v3658_v29, %v4867_v44  ;;  %v1562_v48 = vpop.f32.mrb[63].mxu1  ;;  %3668 = vmatpush3.bf16.msra.mxu0 %v1636_v41  ;;  %v1618_v55 = vmax.f32 %v1568_v42, 0.0 }
 0x32d   :  { %v1563_v59 = vadd.f32 %v1562_v48, %v4861_v33  ;;  %3669 = vmatprep.subr.bf16.mxu0 %v1639_v40  ;;  %v1612_v51 = vmax.f32 %v1560_v46, 0.0 }
 0x32e   :  { %v1621_v50 = vmax.f32 %v1571_v19, 0.0 }
 0x32f   :  { %v1615_v52 = vmax.f32 %v1563_v59, 0.0 }
 0x330   :  { %v1645_v53 = vpack.c.bf16 %v1621_v50, %v1618_v55  ;;  %3670 = vmatpush3.bf16.msra.mxu0 %v1639_v40 }
 0x331   :  { %v1642_v54 = vpack.c.bf16 %v1615_v52, %v1612_v51 }
 0x333   :  { %3671 = vmatprep.subr.bf16.mxu0 %v1642_v54 }
 0x334   :  { %3672 = vmatpush3.bf16.msra.mxu0 %v1642_v54 }
 0x335   :  { %3673 = vmatprep.subr.bf16.mxu0 %v1645_v53 }
 0x338   :  { %3674 = vmatpush3.bf16.msra.mxu0 %v1645_v53 }
 0x33b   :  { %3676 = vmatmul.mubr.bf16.vlgmr.msra.gmra.mrb[80].mxu0 %v4875_v57 }
 0x33c   :  { %3679 = vmatprep.mubr.bf16.mxu0 %v4880_v58 }
 0x343   :  { %3680 = vmatmul.mubr.bf16.gmra.mrb[84].mxu0 %v4887_v6 }
 0x344   :  { %3683 = vmatprep.mubr.bf16.mxu0 %v4892_v22 }
 0x34b   :  { %3684 = vmatmul.mubr.bf16.gmra.mrb[88].mxu0 %v4899_v63 }
 0x34c   :  { %3687 = vmatprep.mubr.bf16.mxu0 %v4904_v1 }
 0x34d   :  { %v1398_v25 = vpop.f32.mrb[48].mxu0 }
 0x34e   :  { %v1399_v35 = vadd.f32 %v1398_v25, %v4824_v8  ;;  %v1400_v16 = vpop.f32.mrb[49].mxu0 }
 0x34f   :  { %v1401_v7 = vadd.f32 %v1400_v16, %v4824_v8  ;;  %v1402_v9 = vpop.f32.mrb[50].mxu0 }
 0x350   :  { %v1403_v11 = vadd.f32 %v1402_v9, %v4826_v13  ;;  %v1404_v12 = vpop.f32.mrb[51].mxu0  ;;  %v1574_v43 = vmax.f32 %v1399_v35, 0.0 }
 0x351   :  { %v1405_v21 = vadd.f32 %v1404_v12, %v4826_v13  ;;  %v1575_v24 = vmax.f32 %v1401_v7, 0.0 }
 0x352   :  { %v1577_v45 = vmax.f32 %v1403_v11, 0.0 }
 0x353   :  { %v1578_v26 = vmax.f32 %v1405_v21, 0.0  ;;  %3688 = vmatmul.mubr.bf16.gmra.mrb[92].mxu0 %v4914_v14 }
 0x354   :  { %v1622_v5 = vpack.c.bf16 %v1577_v45, %v1574_v43  ;;  %2284 = vmatprep.mubr.bf16.mxu0 %v3917_v0 }
 0x355   :  { %v1623_v27 = vpack.c.bf16 %v1578_v26, %v1575_v24  ;;  %v1408_v8 = vpop.f32.mrb[52].mxu0 }
 0x356   :  { %v1409_v18 = vadd.f32 %v1408_v8, %v4828_v47  ;;  %v1410_v30 = vpop.f32.mrb[53].mxu0 }
 0x357   :  { %v1411_v38 = vadd.f32 %v1410_v30, %v4828_v47  ;;  %v1412_v31 = vpop.f32.mrb[54].mxu0  ;;  %1808 = vmatprep.subr.bf16.mxu1 %v1623_v27 }
 0x358   :  { %v1413_v13 = vadd.f32 %v1412_v31, %v4830_v49  ;;  %v1414_v34 = vpop.f32.mrb[55].mxu0  ;;  %1809 = vmatpush1.bf16.msra.mxu1 %v1622_v5  ;;  %v1580_v56 = vmax.f32 %v1409_v18, 0.0 }
 0x359   :  { %v1415_v36 = vadd.f32 %v1414_v34, %v4830_v49  ;;  %v1581_v39 = vmax.f32 %v1411_v38, 0.0 }
 0x35a   :  { %v1583_v37 = vmax.f32 %v1413_v13, 0.0 }
 0x35b   :  { %v1584_v40 = vmax.f32 %v1415_v36, 0.0 }
 0x35c   :  { %v1625_v41 = vpack.c.bf16 %v1583_v37, %v1580_v56 }
 0x35d   :  { %v1626_v10 = vpack.c.bf16 %v1584_v40, %v1581_v39  ;;  %v1418_v42 = vpop.f32.mrb[56].mxu0 }
 0x35e   :  { %v1419_v4 = vadd.f32 %v1418_v42, %v4832_v15  ;;  %v1420_v46 = vpop.f32.mrb[57].mxu0 }
 0x35f   :  { %v1421_v47 = vadd.f32 %v1420_v46, %v4832_v15  ;;  %v1422_v29 = vpop.f32.mrb[58].mxu0  ;;  %1810 = vmatprep.subr.bf16.mxu1 %v1626_v10 }
 0x360   :  { %v1423_v19 = vadd.f32 %v1422_v29, %v4834_v3  ;;  %v1424_v48 = vpop.f32.mrb[59].mxu0  ;;  %1811 = vmatpush1.bf16.msra.mxu1 %v1625_v41  ;;  %v1586_v59 = vmax.f32 %v1419_v4, 0.0 }
 0x361   :  { %v1425_v49 = vadd.f32 %v1424_v48, %v4834_v3  ;;  %v1587_v50 = vmax.f32 %v1421_v47, 0.0 }
 0x362   :  { %v1589_v55 = vmax.f32 %v1423_v19, 0.0 }
 0x363   :  { %v1590_v51 = vmax.f32 %v1425_v49, 0.0 }
 0x364   :  { %v1628_v52 = vpack.c.bf16 %v1589_v55, %v1586_v59 }
 0x365   :  { %v1629_v53 = vpack.c.bf16 %v1590_v51, %v1587_v50  ;;  %v1428_v54 = vpop.f32.mrb[60].mxu0 }
 0x366   :  { %v1429_v25 = vadd.f32 %v1428_v54, %v4836_v17  ;;  %v1430_v35 = vpop.f32.mrb[61].mxu0 }
 0x367   :  { %v1431_v15 = vadd.f32 %v1430_v35, %v4836_v17  ;;  %v1432_v16 = vpop.f32.mrb[62].mxu0  ;;  %1812 = vmatprep.subr.bf16.mxu1 %v1629_v53 }
 0x368   :  { %v1433_v7 = vadd.f32 %v1432_v16, %v4839_v23  ;;  %v1434_v9 = vpop.f32.mrb[63].mxu0  ;;  %1813 = vmatpush1.bf16.msra.mxu1 %v1628_v52  ;;  %v1592_v11 = vmax.f32 %v1429_v25, 0.0 }
 0x369   :  { %v1435_v3 = vadd.f32 %v1434_v9, %v4839_v23  ;;  %v1593_v21 = vmax.f32 %v1431_v15, 0.0 }
 0x36a   :  { %v1595_v12 = vmax.f32 %v1433_v7, 0.0 }
 0x36b   :  { %v1596_v43 = vmax.f32 %v1435_v3, 0.0 }
 0x36c   :  { %v1631_v45 = vpack.c.bf16 %v1595_v12, %v1592_v11 }
 0x36d   :  { %v1632_v24 = vpack.c.bf16 %v1596_v43, %v1593_v21  ;;  %v1438_v26 = vpop.f32.mrb[64].mxu0 }
 0x36e   :  { %v1439_v5 = vadd.f32 %v1438_v26, %v4844_v32  ;;  %v1440_v27 = vpop.f32.mrb[65].mxu0 }
 0x36f   :  { %v1441_v17 = vadd.f32 %v1440_v27, %v4844_v32  ;;  %v1442_v8 = vpop.f32.mrb[66].mxu0  ;;  %1814 = vmatprep.subr.bf16.mxu1 %v1632_v24 }
 0x370   :  { %v1443_v18 = vadd.f32 %v1442_v8, %v4846_v60  ;;  %v1444_v30 = vpop.f32.mrb[67].mxu0  ;;  %1815 = vmatpush1.bf16.msra.mxu1 %v1631_v45  ;;  %v1598_v38 = vmax.f32 %v1439_v5, 0.0 }
 0x371   :  { %v1445_v23 = vadd.f32 %v1444_v30, %v4846_v60  ;;  %v1599_v13 = vmax.f32 %v1441_v17, 0.0 }
 0x372   :  { %v1601_v31 = vmax.f32 %v1443_v18, 0.0 }
 0x373   :  { %v1602_v34 = vmax.f32 %v1445_v23, 0.0 }
 0x374   :  { %v1634_v36 = vpack.c.bf16 %v1601_v31, %v1598_v38 }
 0x375   :  { %v1635_v56 = vpack.c.bf16 %v1602_v34, %v1599_v13  ;;  %v1448_v37 = vpop.f32.mrb[68].mxu0 }
 0x376   :  { %v1449_v39 = vadd.f32 %v1448_v37, %v4851_v2  ;;  %v1450_v40 = vpop.f32.mrb[69].mxu0 }
 0x377   :  { %v1451_v32 = vadd.f32 %v1450_v40, %v4851_v2  ;;  %v1452_v41 = vpop.f32.mrb[70].mxu0  ;;  %1816 = vmatprep.subr.bf16.mxu1 %v1635_v56 }
 0x378   :  { %v1453_v10 = vadd.f32 %v1452_v41, %v4854_v20  ;;  %v1454_v42 = vpop.f32.mrb[71].mxu0  ;;  %1817 = vmatpush1.bf16.msra.mxu1 %v1634_v36  ;;  %v1604_v4 = vmax.f32 %v1449_v39, 0.0 }
 0x379   :  { %v1455_v60 = vadd.f32 %v1454_v42, %v4854_v20  ;;  %v1605_v47 = vmax.f32 %v1451_v32, 0.0 }
 0x37a   :  { %v1607_v46 = vmax.f32 %v1453_v10, 0.0 }
 0x37b   :  { %v1608_v29 = vmax.f32 %v1455_v60, 0.0 }
 0x37c   :  { %v1637_v19 = vpack.c.bf16 %v1607_v46, %v1604_v4 }
 0x37d   :  { %v1638_v48 = vpack.c.bf16 %v1608_v29, %v1605_v47  ;;  %v1458_v49 = vpop.f32.mrb[72].mxu0 }
 0x37e   :  { %v1459_v59 = vadd.f32 %v1458_v49, %v4857_v28  ;;  %v1460_v55 = vpop.f32.mrb[73].mxu0 }
 0x37f   :  { %v1461_v2 = vadd.f32 %v1460_v55, %v4857_v28  ;;  %v1462_v50 = vpop.f32.mrb[74].mxu0  ;;  %1818 = vmatprep.subr.bf16.mxu1 %v1638_v48 }
 0x380   :  { %v1463_v51 = vadd.f32 %v1462_v50, %v4861_v33  ;;  %v1464_v52 = vpop.f32.mrb[75].mxu0  ;;  %1819 = vmatpush1.bf16.msra.mxu1 %v1637_v19  ;;  %v1610_v53 = vmax.f32 %v1459_v59, 0.0 }
 0x381   :  { %v1465_v20 = vadd.f32 %v1464_v52, %v4861_v33  ;;  %v1611_v25 = vmax.f32 %v1461_v2, 0.0 }
 0x382   :  { %v1613_v54 = vmax.f32 %v1463_v51, 0.0 }
 0x383   :  { %v1614_v35 = vmax.f32 %v1465_v20, 0.0 }
 0x384   :  { %v1640_v15 = vpack.c.bf16 %v1613_v54, %v1610_v53 }
 0x385   :  { %v1641_v16 = vpack.c.bf16 %v1614_v35, %v1611_v25  ;;  %v1468_v7 = vpop.f32.mrb[76].mxu0 }
 0x386   :  { %v1469_v9 = vadd.f32 %v1468_v7, %v4864_v62  ;;  %v1470_v3 = vpop.f32.mrb[77].mxu0 }
 0x387   :  { %v1471_v28 = vadd.f32 %v1470_v3, %v4864_v62  ;;  %v1472_v11 = vpop.f32.mrb[78].mxu0  ;;  %1820 = vmatprep.subr.bf16.mxu1 %v1641_v16  ;;  %v4968_v62 = vpop.permute.xlu0 %1682 }
 0x388   :  { %v1473_v12 = vadd.f32 %v1472_v11, %v4867_v44  ;;  %v1474_v21 = vpop.f32.mrb[79].mxu0  ;;  %1821 = vmatpush1.bf16.msra.mxu1 %v1640_v15  ;;  %v1616_v43 = vmax.f32 %v1469_v9, 0.0 }
 0x389   :  { %v1475_v33 = vadd.f32 %v1474_v21, %v4867_v44  ;;  %v1617_v24 = vmax.f32 %v1471_v28, 0.0  ;;  %v4970_v44 = vpop.permute.xlu1 %1687 }
 0x38a   :  { %v1619_v45 = vmax.f32 %v1473_v12, 0.0 }
 0x38b   :  { %v1620_v26 = vmax.f32 %v1475_v33, 0.0 }
 0x38c   :  { %v1643_v5 = vpack.c.bf16 %v1619_v45, %v1616_v43 }
 0x38d   :  { %v1644_v27 = vpack.c.bf16 %v1620_v26, %v1617_v24 }
 0x38f   :  { %1822 = vmatprep.subr.bf16.mxu1 %v1644_v27 }
 0x390   :  { %1823 = vmatpush1.bf16.msra.mxu1 %v1643_v5 }
 0x393   :  { %1841 = vmatmul.mubr.bf16.vlgmr.msra.gmra.mrb[64].mxu1 %v4821_v61  ;;  %v4964_v61 = vld [vmem:[%s5354_s3 + $0xc0] sm:$0xff]  }
 0x394   :  { %1850 = vmatprep.mubr.bf16.mxu1 %v3917_v0 }
 0x39b   :  { %1851 = vmatmul.mubr.bf16.gmra.mrb[68].mxu1 %v4875_v57  ;;  %v4972_v57 = vpop.permute.xlu0 %1692 }
 0x39c   :  { %1860 = vmatprep.mubr.bf16.mxu1 %v3917_v0 }
 0x3a3   :  { %1861 = vmatmul.mubr.bf16.gmra.mrb[72].mxu1 %v4880_v58  ;;  %v4974_v58 = vpop.permute.xlu1 %1697 }
 0x3a4   :  { %1870 = vmatprep.mubr.bf16.mxu1 %v3917_v0 }
 0x3ab   :  { %1871 = vmatmul.mubr.bf16.gmra.mrb[76].mxu1 %v4887_v6  ;;  %v4976_v6 = vpop.permute.xlu0 %1702 }
 0x3ac   :  { %1880 = vmatprep.mubr.bf16.mxu1 %v3917_v0 }
 0x3b3   :  { %1881 = vmatmul.mubr.bf16.gmra.mrb[80].mxu1 %v4892_v22  ;;  %v4978_v22 = vpop.permute.xlu1 %1707 }
 0x3b4   :  { %1890 = vmatprep.mubr.bf16.mxu1 %v3917_v0 }
 0x3b7   :  { %v4983_v8 = vpop.permute.xlu1 %1717 }
 0x3bb   :  { %1891 = vmatmul.mubr.bf16.gmra.mrb[84].mxu1 %v4899_v63  ;;  %v4980_v63 = vpop.permute.xlu0 %1712  ;;  %v4990_v40 = vpop.permute.xlu1 %1727 }
 0x3bc   :  { %1900 = vmatprep.mubr.bf16.mxu1 %v3917_v0 }
 0x3bf   :  { %v4988_v36 = vpop.permute.xlu0 %1722  ;;  %v4998_v59 = vpop.permute.xlu1 %1737 }
 0x3c3   :  { %1901 = vmatmul.mubr.bf16.gmra.mrb[88].mxu1 %v4904_v1  ;;  %v4995_v29 = vpop.permute.xlu0 %1732  ;;  %v5005_v7 = vpop.permute.xlu1 %1747 }
 0x3c4   :  { %1910 = vmatprep.mubr.bf16.mxu1 %v3917_v0 }
 0x3c7   :  { %v5001_v54 = vpop.permute.xlu0 %1742  ;;  %v5011_v5 = vpop.permute.xlu1 %1757 }
 0x3cb   :  { %1911 = vmatmul.mubr.bf16.gmra.mrb[92].mxu1 %v4914_v14  ;;  %v5008_v33 = vpop.permute.xlu0 %1752 }
 0x3cc   :  { %3707 = vmatprep.mubr.bf16.mxu1 %v4964_v61 }
 0x40e   :  { %v3677_v1 = vpop.f32.mrb[80].mxu0 }
 0x40f   :  { %v1964_v17 = vadd.f32 %v3677_v1, %v4972_v57  ;;  %v1955_v14 = vpop.f32.mrb[81].mxu0 }
 0x410   :  { %v1956_v18 = vadd.f32 %v1955_v14, %v4968_v62  ;;  %v3678_v30 = vpop.f32.mrb[82].mxu0 }
 0x411   :  { %v1967_v23 = vadd.f32 %v3678_v30, %v4974_v58  ;;  %v1958_v38 = vpop.f32.mrb[83].mxu0  ;;  %v2026_v13 = vmax.f32 %v1964_v17, 0.0 }
 0x412   :  { %v1959_v31 = vadd.f32 %v1958_v38, %v4970_v44  ;;  %v2020_v56 = vmax.f32 %v1956_v18, 0.0 }
 0x413   :  { %v2029_v34 = vmax.f32 %v1967_v23, 0.0 }
 0x414   :  { %v2023_v37 = vmax.f32 %v1959_v31, 0.0 }
 0x415   :  { %v2071_v39 = vpack.c.bf16 %v2029_v34, %v2026_v13 }
 0x416   :  { %v2068_v32 = vpack.c.bf16 %v2023_v37, %v2020_v56  ;;  %v3681_v41 = vpop.f32.mrb[84].mxu0  ;;  %v5019_v56 = vld [vmem:[%s5354_s3 + $0xc8] sm:$0xff]   ;;  %v5024_v37 = vld [vmem:[%s5354_s3 + $0xd0] sm:$0xff]  }
 0x417   :  { %v1980_v10 = vadd.f32 %v3681_v41, %v4980_v63  ;;  %v1971_v42 = vpop.f32.mrb[85].mxu0  ;;  %v5043_v41 = vld [vmem:[%s5354_s3 + $0xe8] sm:$0xff]  }
 0x418   :  { %v1972_v60 = vadd.f32 %v1971_v42, %v4976_v6  ;;  %v3682_v4 = vpop.f32.mrb[86].mxu0  ;;  %3691 = vmatprep.subr.bf16.mxu1 %v2068_v32  ;;  %v5055_v42 = vld [vmem:[%s5354_s3 + $0xf8] sm:$0xff]  }
 0x419   :  { %v1983_v46 = vadd.f32 %v3682_v4, %v4983_v8  ;;  %v1974_v47 = vpop.f32.mrb[87].mxu0  ;;  %3692 = vmatpush3.bf16.msra.mxu1 %v2068_v32  ;;  %v2038_v48 = vmax.f32 %v1980_v10, 0.0  ;;  %v5036_v32 = vld [vmem:[%s5354_s3 + $0xe0] sm:$0xff]   ;;  %v5048_v10 = vld [vmem:[%s5354_s3 + $0xf0] sm:$0xff]  }
 0x41a   :  { %v1975_v19 = vadd.f32 %v1974_v47, %v4978_v22  ;;  %3693 = vmatprep.subr.bf16.mxu1 %v2071_v39  ;;  %v2032_v55 = vmax.f32 %v1972_v60, 0.0 }
 0x41b   :  { %v2041_v49 = vmax.f32 %v1983_v46, 0.0 }
 0x41c   :  { %v2035_v2 = vmax.f32 %v1975_v19, 0.0 }
 0x41d   :  { %v2077_v50 = vpack.c.bf16 %v2041_v49, %v2038_v48  ;;  %3694 = vmatpush3.bf16.msra.mxu1 %v2071_v39  ;;  %v5031_v39 = vld [vmem:[%s5354_s3 + $0xd8] sm:$0xff]  }
 0x41e   :  { %v2074_v51 = vpack.c.bf16 %v2035_v2, %v2032_v55  ;;  %v3685_v52 = vpop.f32.mrb[88].mxu0 }
 0x41f   :  { %v1996_v20 = vadd.f32 %v3685_v52, %v4995_v29  ;;  %v1987_v53 = vpop.f32.mrb[89].mxu0 }
 0x420   :  { %v1988_v25 = vadd.f32 %v1987_v53, %v4988_v36  ;;  %v3686_v35 = vpop.f32.mrb[90].mxu0  ;;  %3695 = vmatprep.subr.bf16.mxu1 %v2074_v51 }
 0x421   :  { %v1999_v15 = vadd.f32 %v3686_v35, %v4998_v59  ;;  %v1990_v16 = vpop.f32.mrb[91].mxu0  ;;  %3696 = vmatpush3.bf16.msra.mxu1 %v2074_v51  ;;  %v2050_v3 = vmax.f32 %v1996_v20, 0.0 }
 0x422   :  { %v1991_v9 = vadd.f32 %v1990_v16, %v4990_v40  ;;  %3697 = vmatprep.subr.bf16.mxu1 %v2077_v50  ;;  %v2044_v11 = vmax.f32 %v1988_v25, 0.0 }
 0x423   :  { %v2053_v28 = vmax.f32 %v1999_v15, 0.0 }
 0x424   :  { %v2047_v12 = vmax.f32 %v1991_v9, 0.0 }
 0x425   :  { %v2083_v21 = vpack.c.bf16 %v2053_v28, %v2050_v3  ;;  %3698 = vmatpush3.bf16.msra.mxu1 %v2077_v50 }
 0x426   :  { %v2080_v43 = vpack.c.bf16 %v2047_v12, %v2044_v11  ;;  %v3689_v45 = vpop.f32.mrb[92].mxu0 }
 0x427   :  { %v2012_v24 = vadd.f32 %v3689_v45, %v5008_v33  ;;  %v2003_v26 = vpop.f32.mrb[93].mxu0 }
 0x428   :  { %v2004_v27 = vadd.f32 %v2003_v26, %v5001_v54  ;;  %v3690_v1 = vpop.f32.mrb[94].mxu0  ;;  %3699 = vmatprep.subr.bf16.mxu1 %v2080_v43 }
 0x429   :  { %v2015_v17 = vadd.f32 %v3690_v1, %v5011_v5  ;;  %v2006_v14 = vpop.f32.mrb[95].mxu0  ;;  %3700 = vmatpush3.bf16.msra.mxu1 %v2080_v43  ;;  %v2062_v30 = vmax.f32 %v2012_v24, 0.0 }
 0x42a   :  { %v2007_v18 = vadd.f32 %v2006_v14, %v5005_v7  ;;  %3701 = vmatprep.subr.bf16.mxu1 %v2083_v21  ;;  %v2056_v38 = vmax.f32 %v2004_v27, 0.0 }
 0x42b   :  { %v2065_v23 = vmax.f32 %v2015_v17, 0.0 }
 0x42c   :  { %v2059_v31 = vmax.f32 %v2007_v18, 0.0 }
 0x42d   :  { %v2089_v13 = vpack.c.bf16 %v2065_v23, %v2062_v30  ;;  %3702 = vmatpush3.bf16.msra.mxu1 %v2083_v21 }
 0x42e   :  { %v2086_v34 = vpack.c.bf16 %v2059_v31, %v2056_v38 }
 0x430   :  { %3703 = vmatprep.subr.bf16.mxu1 %v2086_v34 }
 0x431   :  { %3704 = vmatpush3.bf16.msra.mxu1 %v2086_v34 }
 0x432   :  { %3705 = vmatprep.subr.bf16.mxu1 %v2089_v13 }
 0x435   :  { %3706 = vmatpush3.bf16.msra.mxu1 %v2089_v13 }
 0x438   :  { %3708 = vmatmul.mubr.bf16.vlgmr.msra.gmra.mrb[96].mxu1 %v5019_v56 }
 0x439   :  { %3711 = vmatprep.mubr.bf16.mxu1 %v5024_v37 }
 0x440   :  { %3712 = vmatmul.mubr.bf16.gmra.mrb[100].mxu1 %v5031_v39 }
 0x441   :  { %3715 = vmatprep.mubr.bf16.mxu1 %v5036_v32 }
 0x448   :  { %3716 = vmatmul.mubr.bf16.gmra.mrb[104].mxu1 %v5043_v41 }
 0x449   :  { %3719 = vmatprep.mubr.bf16.mxu1 %v5048_v10 }
 0x450   :  { %3720 = vmatmul.mubr.bf16.gmra.mrb[108].mxu1 %v5055_v42 }
 0x451   :  { %2728 = vmatprep.mubr.bf16.mxu1 %v3917_v0 }
 0x466   :  { %v1842_v60 = vpop.f32.mrb[64].mxu1 }
 0x467   :  { %v1843_v4 = vadd.f32 %v1842_v60, %v4968_v62  ;;  %v1844_v46 = vpop.f32.mrb[65].mxu1 }
 0x468   :  { %v1845_v47 = vadd.f32 %v1844_v46, %v4968_v62  ;;  %v1846_v19 = vpop.f32.mrb[66].mxu1 }
 0x469   :  { %v1847_v48 = vadd.f32 %v1846_v19, %v4970_v44  ;;  %v1848_v49 = vpop.f32.mrb[67].mxu1  ;;  %v2018_v2 = vmax.f32 %v1843_v4, 0.0 }
 0x46a   :  { %v1849_v55 = vadd.f32 %v1848_v49, %v4970_v44  ;;  %v2019_v51 = vmax.f32 %v1845_v47, 0.0 }
 0x46b   :  { %v2021_v50 = vmax.f32 %v1847_v48, 0.0 }
 0x46c   :  { %v2022_v52 = vmax.f32 %v1849_v55, 0.0 }
 0x46d   :  { %v2066_v20 = vpack.c.bf16 %v2021_v50, %v2018_v2 }
 0x46e   :  { %v2067_v53 = vpack.c.bf16 %v2022_v52, %v2019_v51  ;;  %v1852_v25 = vpop.f32.mrb[68].mxu1 }
 0x46f   :  { %v1853_v35 = vadd.f32 %v1852_v25, %v4972_v57  ;;  %v1854_v15 = vpop.f32.mrb[69].mxu1 }
 0x470   :  { %v1855_v16 = vadd.f32 %v1854_v15, %v4972_v57  ;;  %v1856_v9 = vpop.f32.mrb[70].mxu1  ;;  %2252 = vmatprep.subr.bf16.mxu0 %v2067_v53 }
 0x471   :  { %v1857_v62 = vadd.f32 %v1856_v9, %v4974_v58  ;;  %v1858_v3 = vpop.f32.mrb[71].mxu1  ;;  %2253 = vmatpush1.bf16.msra.mxu0 %v2066_v20  ;;  %v2024_v28 = vmax.f32 %v1853_v35, 0.0 }
 0x472   :  { %v1859_v44 = vadd.f32 %v1858_v3, %v4974_v58  ;;  %v2025_v12 = vmax.f32 %v1855_v16, 0.0 }
 0x473   :  { %v2027_v11 = vmax.f32 %v1857_v62, 0.0 }
 0x474   :  { %v2028_v21 = vmax.f32 %v1859_v44, 0.0 }
 0x475   :  { %v2069_v43 = vpack.c.bf16 %v2027_v11, %v2024_v28 }
 0x476   :  { %v2070_v45 = vpack.c.bf16 %v2028_v21, %v2025_v12  ;;  %v1862_v24 = vpop.f32.mrb[72].mxu1 }
 0x477   :  { %v1863_v26 = vadd.f32 %v1862_v24, %v4976_v6  ;;  %v1864_v27 = vpop.f32.mrb[73].mxu1 }
 0x478   :  { %v1865_v57 = vadd.f32 %v1864_v27, %v4976_v6  ;;  %v1866_v1 = vpop.f32.mrb[74].mxu1  ;;  %2254 = vmatprep.subr.bf16.mxu0 %v2070_v45 }
 0x479   :  { %v1867_v17 = vadd.f32 %v1866_v1, %v4978_v22  ;;  %v1868_v14 = vpop.f32.mrb[75].mxu1  ;;  %2255 = vmatpush1.bf16.msra.mxu0 %v2069_v43  ;;  %v2030_v18 = vmax.f32 %v1863_v26, 0.0 }
 0x47a   :  { %v1869_v58 = vadd.f32 %v1868_v14, %v4978_v22  ;;  %v2031_v23 = vmax.f32 %v1865_v57, 0.0 }
 0x47b   :  { %v2033_v30 = vmax.f32 %v1867_v17, 0.0 }
 0x47c   :  { %v2034_v38 = vmax.f32 %v1869_v58, 0.0 }
 0x47d   :  { %v2072_v31 = vpack.c.bf16 %v2033_v30, %v2030_v18 }
 0x47e   :  { %v2073_v13 = vpack.c.bf16 %v2034_v38, %v2031_v23  ;;  %v1872_v34 = vpop.f32.mrb[76].mxu1 }
 0x47f   :  { %v1873_v60 = vadd.f32 %v1872_v34, %v4980_v63  ;;  %v1874_v4 = vpop.f32.mrb[77].mxu1 }
 0x480   :  { %v1875_v6 = vadd.f32 %v1874_v4, %v4980_v63  ;;  %v1876_v46 = vpop.f32.mrb[78].mxu1  ;;  %2256 = vmatprep.subr.bf16.mxu0 %v2073_v13 }
 0x481   :  { %v1877_v47 = vadd.f32 %v1876_v46, %v4983_v8  ;;  %v1878_v19 = vpop.f32.mrb[79].mxu1  ;;  %2257 = vmatpush1.bf16.msra.mxu0 %v2072_v31  ;;  %v2036_v48 = vmax.f32 %v1873_v60, 0.0 }
 0x482   :  { %v1879_v22 = vadd.f32 %v1878_v19, %v4983_v8  ;;  %v2037_v55 = vmax.f32 %v1875_v6, 0.0 }
 0x483   :  { %v2039_v49 = vmax.f32 %v1877_v47, 0.0 }
 0x484   :  { %v2040_v2 = vmax.f32 %v1879_v22, 0.0 }
 0x485   :  { %v2075_v50 = vpack.c.bf16 %v2039_v49, %v2036_v48 }
 0x486   :  { %v2076_v51 = vpack.c.bf16 %v2040_v2, %v2037_v55  ;;  %v1882_v52 = vpop.f32.mrb[80].mxu1 }
 0x487   :  { %v1883_v20 = vadd.f32 %v1882_v52, %v4988_v36  ;;  %v1884_v53 = vpop.f32.mrb[81].mxu1 }
 0x488   :  { %v1885_v63 = vadd.f32 %v1884_v53, %v4988_v36  ;;  %v1886_v25 = vpop.f32.mrb[82].mxu1  ;;  %2258 = vmatprep.subr.bf16.mxu0 %v2076_v51 }
 0x489   :  { %v1887_v35 = vadd.f32 %v1886_v25, %v4990_v40  ;;  %v1888_v15 = vpop.f32.mrb[83].mxu1  ;;  %2259 = vmatpush1.bf16.msra.mxu0 %v2075_v50  ;;  %v2042_v16 = vmax.f32 %v1883_v20, 0.0 }
 0x48a   :  { %v1889_v8 = vadd.f32 %v1888_v15, %v4990_v40  ;;  %v2043_v62 = vmax.f32 %v1885_v63, 0.0 }
 0x48b   :  { %v2045_v9 = vmax.f32 %v1887_v35, 0.0 }
 0x48c   :  { %v2046_v3 = vmax.f32 %v1889_v8, 0.0 }
 0x48d   :  { %v2078_v44 = vpack.c.bf16 %v2045_v9, %v2042_v16 }
 0x48e   :  { %v2079_v28 = vpack.c.bf16 %v2046_v3, %v2043_v62  ;;  %v1892_v11 = vpop.f32.mrb[84].mxu1 }
 0x48f   :  { %v1893_v12 = vadd.f32 %v1892_v11, %v4995_v29  ;;  %v1894_v21 = vpop.f32.mrb[85].mxu1 }
 0x490   :  { %v1895_v36 = vadd.f32 %v1894_v21, %v4995_v29  ;;  %v1896_v43 = vpop.f32.mrb[86].mxu1  ;;  %2260 = vmatprep.subr.bf16.mxu0 %v2079_v28 }
 0x491   :  { %v1897_v45 = vadd.f32 %v1896_v43, %v4998_v59  ;;  %v1898_v24 = vpop.f32.mrb[87].mxu1  ;;  %2261 = vmatpush1.bf16.msra.mxu0 %v2078_v44  ;;  %v2048_v26 = vmax.f32 %v1893_v12, 0.0 }
 0x492   :  { %v1899_v40 = vadd.f32 %v1898_v24, %v4998_v59  ;;  %v2049_v57 = vmax.f32 %v1895_v36, 0.0 }
 0x493   :  { %v2051_v27 = vmax.f32 %v1897_v45, 0.0 }
 0x494   :  { %v2052_v1 = vmax.f32 %v1899_v40, 0.0 }
 0x495   :  { %v2081_v17 = vpack.c.bf16 %v2051_v27, %v2048_v26 }
 0x496   :  { %v2082_v14 = vpack.c.bf16 %v2052_v1, %v2049_v57  ;;  %v1902_v58 = vpop.f32.mrb[88].mxu1 }
 0x497   :  { %v1903_v18 = vadd.f32 %v1902_v58, %v5001_v54  ;;  %v1904_v30 = vpop.f32.mrb[89].mxu1 }
 0x498   :  { %v1905_v29 = vadd.f32 %v1904_v30, %v5001_v54  ;;  %v1906_v23 = vpop.f32.mrb[90].mxu1  ;;  %2262 = vmatprep.subr.bf16.mxu0 %v2082_v14 }
 0x499   :  { %v1907_v38 = vadd.f32 %v1906_v23, %v5005_v7  ;;  %v1908_v31 = vpop.f32.mrb[91].mxu1  ;;  %2263 = vmatpush1.bf16.msra.mxu0 %v2081_v17  ;;  %v2054_v13 = vmax.f32 %v1903_v18, 0.0 }
 0x49a   :  { %v1909_v59 = vadd.f32 %v1908_v31, %v5005_v7  ;;  %v2055_v60 = vmax.f32 %v1905_v29, 0.0 }
 0x49b   :  { %v2057_v34 = vmax.f32 %v1907_v38, 0.0 }
 0x49c   :  { %v2058_v4 = vmax.f32 %v1909_v59, 0.0 }
 0x49d   :  { %v2084_v6 = vpack.c.bf16 %v2057_v34, %v2054_v13 }
 0x49e   :  { %v2085_v46 = vpack.c.bf16 %v2058_v4, %v2055_v60  ;;  %v1912_v47 = vpop.f32.mrb[92].mxu1 }
 0x49f   :  { %v1913_v19 = vadd.f32 %v1912_v47, %v5008_v33  ;;  %v1914_v22 = vpop.f32.mrb[93].mxu1 }
 0x4a0   :  { %v1915_v54 = vadd.f32 %v1914_v22, %v5008_v33  ;;  %v1916_v48 = vpop.f32.mrb[94].mxu1  ;;  %2264 = vmatprep.subr.bf16.mxu0 %v2085_v46  ;;  %v5112_v33 = vpop.permute.xlu0 %2126 }
 0x4a1   :  { %v1917_v49 = vadd.f32 %v1916_v48, %v5011_v5  ;;  %v1918_v55 = vpop.f32.mrb[95].mxu1  ;;  %2265 = vmatpush1.bf16.msra.mxu0 %v2084_v6  ;;  %v2060_v2 = vmax.f32 %v1913_v19, 0.0 }
 0x4a2   :  { %v1919_v7 = vadd.f32 %v1918_v55, %v5011_v5  ;;  %v2061_v51 = vmax.f32 %v1915_v54, 0.0  ;;  %v5114_v5 = vpop.permute.xlu1 %2131 }
 0x4a3   :  { %v2063_v50 = vmax.f32 %v1917_v49, 0.0 }
 0x4a4   :  { %v2064_v52 = vmax.f32 %v1919_v7, 0.0 }
 0x4a5   :  { %v2087_v20 = vpack.c.bf16 %v2063_v50, %v2060_v2 }
 0x4a6   :  { %v2088_v53 = vpack.c.bf16 %v2064_v52, %v2061_v51 }
 0x4a8   :  { %2266 = vmatprep.subr.bf16.mxu0 %v2088_v53 }
 0x4a9   :  { %2267 = vmatpush1.bf16.msra.mxu0 %v2087_v20 }
 0x4ac   :  { %2285 = vmatmul.mubr.bf16.vlgmr.msra.gmra.mrb[96].mxu0 %v4964_v61  ;;  %v5108_v61 = vld [vmem:[%s5354_s3 + $0x100] sm:$0xff]  }
 0x4ad   :  { %2294 = vmatprep.mubr.bf16.mxu0 %v3917_v0 }
 0x4b4   :  { %2295 = vmatmul.mubr.bf16.gmra.mrb[100].mxu0 %v5019_v56  ;;  %v5116_v56 = vpop.permute.xlu0 %2136 }
 0x4b5   :  { %2304 = vmatprep.mubr.bf16.mxu0 %v3917_v0 }
 0x4bc   :  { %2305 = vmatmul.mubr.bf16.gmra.mrb[104].mxu0 %v5024_v37  ;;  %v5118_v37 = vpop.permute.xlu1 %2141 }
 0x4bd   :  { %2314 = vmatprep.mubr.bf16.mxu0 %v3917_v0 }
 0x4c4   :  { %2315 = vmatmul.mubr.bf16.gmra.mrb[108].mxu0 %v5031_v39  ;;  %v5120_v39 = vpop.permute.xlu0 %2146 }
 0x4c5   :  { %2324 = vmatprep.mubr.bf16.mxu0 %v3917_v0 }
 0x4cc   :  { %2325 = vmatmul.mubr.bf16.gmra.mrb[112].mxu0 %v5036_v32  ;;  %v5122_v32 = vpop.permute.xlu1 %2151 }
 0x4cd   :  { %2334 = vmatprep.mubr.bf16.mxu0 %v3917_v0 }
 0x4d0   :  { %v5127_v25 = vpop.permute.xlu1 %2161 }
 0x4d4   :  { %2335 = vmatmul.mubr.bf16.gmra.mrb[116].mxu0 %v5043_v41  ;;  %v5124_v41 = vpop.permute.xlu0 %2156  ;;  %v5134_v21 = vpop.permute.xlu1 %2171 }
 0x4d5   :  { %2344 = vmatprep.mubr.bf16.mxu0 %v3917_v0 }
 0x4d8   :  { %v5132_v44 = vpop.permute.xlu0 %2166  ;;  %v5142_v18 = vpop.permute.xlu1 %2181 }
 0x4dc   :  { %2345 = vmatmul.mubr.bf16.gmra.mrb[120].mxu0 %v5048_v10  ;;  %v5139_v1 = vpop.permute.xlu0 %2176  ;;  %v5149_v47 = vpop.permute.xlu1 %2191 }
 0x4dd   :  { %2354 = vmatprep.mubr.bf16.mxu0 %v3917_v0 }
 0x4e0   :  { %v5145_v34 = vpop.permute.xlu0 %2186  ;;  %v5155_v20 = vpop.permute.xlu1 %2201 }
 0x4e4   :  { %2355 = vmatmul.mubr.bf16.gmra.mrb[124].mxu0 %v5055_v42  ;;  %v5152_v7 = vpop.permute.xlu0 %2196 }
 0x4e5   :  { %3739 = vmatprep.mubr.bf16.mxu0 %v5108_v61 }
 0x50b   :  { %v3709_v10 = vpop.f32.mrb[96].mxu1 }
 0x50c   :  { %v2408_v63 = vadd.f32 %v3709_v10, %v5116_v56  ;;  %v2399_v42 = vpop.f32.mrb[97].mxu1 }
 0x50d   :  { %v2400_v35 = vadd.f32 %v2399_v42, %v5112_v33  ;;  %v3710_v15 = vpop.f32.mrb[98].mxu1 }
 0x50e   :  { %v2411_v8 = vadd.f32 %v3710_v15, %v5118_v37  ;;  %v2402_v16 = vpop.f32.mrb[99].mxu1  ;;  %v2470_v62 = vmax.f32 %v2408_v63, 0.0 }
 0x50f   :  { %v2403_v9 = vadd.f32 %v2402_v16, %v5114_v5  ;;  %v2464_v28 = vmax.f32 %v2400_v35, 0.0 }
 0x510   :  { %v2473_v3 = vmax.f32 %v2411_v8, 0.0 }
 0x511   :  { %v2467_v11 = vmax.f32 %v2403_v9, 0.0 }
 0x512   :  { %v2515_v12 = vpack.c.bf16 %v2473_v3, %v2470_v62 }
 0x513   :  { %v2512_v36 = vpack.c.bf16 %v2467_v11, %v2464_v28  ;;  %v3713_v43 = vpop.f32.mrb[100].mxu1  ;;  %v5163_v28 = vld [vmem:[%s5354_s3 + $0x108] sm:$0xff]   ;;  %v5168_v11 = vld [vmem:[%s5354_s3 + $0x110] sm:$0xff]  }
 0x514   :  { %v2424_v45 = vadd.f32 %v3713_v43, %v5124_v41  ;;  %v2415_v24 = vpop.f32.mrb[101].mxu1  ;;  %v5187_v43 = vld [vmem:[%s5354_s3 + $0x128] sm:$0xff]  }
 0x515   :  { %v2416_v40 = vadd.f32 %v2415_v24, %v5120_v39  ;;  %v3714_v26 = vpop.f32.mrb[102].mxu1  ;;  %3723 = vmatprep.subr.bf16.mxu0 %v2512_v36  ;;  %v5199_v24 = vld [vmem:[%s5354_s3 + $0x138] sm:$0xff]  }
 0x516   :  { %v2427_v27 = vadd.f32 %v3714_v26, %v5127_v25  ;;  %v2418_v57 = vpop.f32.mrb[103].mxu1  ;;  %3724 = vmatpush3.bf16.msra.mxu0 %v2512_v36  ;;  %v2482_v14 = vmax.f32 %v2424_v45, 0.0  ;;  %v5180_v36 = vld [vmem:[%s5354_s3 + $0x120] sm:$0xff]   ;;  %v5192_v45 = vld [vmem:[%s5354_s3 + $0x130] sm:$0xff]  }
 0x517   :  { %v2419_v17 = vadd.f32 %v2418_v57, %v5122_v32  ;;  %3725 = vmatprep.subr.bf16.mxu0 %v2515_v12  ;;  %v2476_v30 = vmax.f32 %v2416_v40, 0.0 }
 0x518   :  { %v2485_v58 = vmax.f32 %v2427_v27, 0.0 }
 0x519   :  { %v2479_v29 = vmax.f32 %v2419_v17, 0.0 }
 0x51a   :  { %v2521_v23 = vpack.c.bf16 %v2485_v58, %v2482_v14  ;;  %3726 = vmatpush3.bf16.msra.mxu0 %v2515_v12  ;;  %v5175_v12 = vld [vmem:[%s5354_s3 + $0x118] sm:$0xff]  }
 0x51b   :  { %v2518_v38 = vpack.c.bf16 %v2479_v29, %v2476_v30  ;;  %v3717_v31 = vpop.f32.mrb[104].mxu1 }
 0x51c   :  { %v2440_v59 = vadd.f32 %v3717_v31, %v5139_v1  ;;  %v2431_v13 = vpop.f32.mrb[105].mxu1 }
 0x51d   :  { %v2432_v60 = vadd.f32 %v2431_v13, %v5132_v44  ;;  %v3718_v4 = vpop.f32.mrb[106].mxu1  ;;  %3727 = vmatprep.subr.bf16.mxu0 %v2518_v38 }
 0x51e   :  { %v2443_v6 = vadd.f32 %v3718_v4, %v5142_v18  ;;  %v2434_v46 = vpop.f32.mrb[107].mxu1  ;;  %3728 = vmatpush3.bf16.msra.mxu0 %v2518_v38  ;;  %v2494_v22 = vmax.f32 %v2440_v59, 0.0 }
 0x51f   :  { %v2435_v19 = vadd.f32 %v2434_v46, %v5134_v21  ;;  %3729 = vmatprep.subr.bf16.mxu0 %v2521_v23  ;;  %v2488_v48 = vmax.f32 %v2432_v60, 0.0 }
 0x520   :  { %v2497_v54 = vmax.f32 %v2443_v6, 0.0 }
 0x521   :  { %v2491_v49 = vmax.f32 %v2435_v19, 0.0 }
 0x522   :  { %v2527_v55 = vpack.c.bf16 %v2497_v54, %v2494_v22  ;;  %3730 = vmatpush3.bf16.msra.mxu0 %v2521_v23 }
 0x523   :  { %v2524_v2 = vpack.c.bf16 %v2491_v49, %v2488_v48  ;;  %v3721_v50 = vpop.f32.mrb[108].mxu1 }
 0x524   :  { %v2456_v51 = vadd.f32 %v3721_v50, %v5152_v7  ;;  %v2447_v52 = vpop.f32.mrb[109].mxu1 }
 0x525   :  { %v2448_v53 = vadd.f32 %v2447_v52, %v5145_v34  ;;  %v3722_v10 = vpop.f32.mrb[110].mxu1  ;;  %3731 = vmatprep.subr.bf16.mxu0 %v2524_v2 }
 0x526   :  { %v2459_v63 = vadd.f32 %v3722_v10, %v5155_v20  ;;  %v2450_v42 = vpop.f32.mrb[111].mxu1  ;;  %3732 = vmatpush3.bf16.msra.mxu0 %v2524_v2  ;;  %v2506_v15 = vmax.f32 %v2456_v51, 0.0 }
 0x527   :  { %v2451_v35 = vadd.f32 %v2450_v42, %v5149_v47  ;;  %3733 = vmatprep.subr.bf16.mxu0 %v2527_v55  ;;  %v2500_v16 = vmax.f32 %v2448_v53, 0.0 }
 0x528   :  { %v2509_v8 = vmax.f32 %v2459_v63, 0.0 }
 0x529   :  { %v2503_v9 = vmax.f32 %v2451_v35, 0.0 }
 0x52a   :  { %v2533_v62 = vpack.c.bf16 %v2509_v8, %v2506_v15  ;;  %3734 = vmatpush3.bf16.msra.mxu0 %v2527_v55 }
 0x52b   :  { %v2530_v3 = vpack.c.bf16 %v2503_v9, %v2500_v16 }
 0x52d   :  { %3735 = vmatprep.subr.bf16.mxu0 %v2530_v3 }
 0x52e   :  { %3736 = vmatpush3.bf16.msra.mxu0 %v2530_v3 }
 0x52f   :  { %3737 = vmatprep.subr.bf16.mxu0 %v2533_v62 }
 0x532   :  { %3738 = vmatpush3.bf16.msra.mxu0 %v2533_v62 }
 0x535   :  { %3740 = vmatmul.mubr.bf16.vlgmr.msra.gmra.mrb[128].mxu0 %v5163_v28 }
 0x536   :  { %3743 = vmatprep.mubr.bf16.mxu0 %v5168_v11 }
 0x53d   :  { %3744 = vmatmul.mubr.bf16.gmra.mrb[132].mxu0 %v5175_v12 }
 0x53e   :  { %3747 = vmatprep.mubr.bf16.mxu0 %v5180_v36 }
 0x545   :  { %3748 = vmatmul.mubr.bf16.gmra.mrb[136].mxu0 %v5187_v43 }
 0x546   :  { %3751 = vmatprep.mubr.bf16.mxu0 %v5192_v45 }
 0x54d   :  { %3752 = vmatmul.mubr.bf16.gmra.mrb[140].mxu0 %v5199_v24 }
 0x54e   :  { %3021 = vmatprep.mubr.bf16.mxu0 %v3917_v0 }
 0x57f   :  { %v2286_v40 = vpop.f32.mrb[96].mxu0 }
 0x580   :  { %v2287_v26 = vadd.f32 %v2286_v40, %v5112_v33  ;;  %v2288_v27 = vpop.f32.mrb[97].mxu0 }
 0x581   :  { %v2289_v57 = vadd.f32 %v2288_v27, %v5112_v33  ;;  %v2290_v17 = vpop.f32.mrb[98].mxu0 }
 0x582   :  { %v2291_v14 = vadd.f32 %v2290_v17, %v5114_v5  ;;  %v2292_v58 = vpop.f32.mrb[99].mxu0  ;;  %v2462_v29 = vmax.f32 %v2287_v26, 0.0 }
 0x583   :  { %v2293_v30 = vadd.f32 %v2292_v58, %v5114_v5  ;;  %v2463_v38 = vmax.f32 %v2289_v57, 0.0 }
 0x584   :  { %v2465_v23 = vmax.f32 %v2291_v14, 0.0 }
 0x585   :  { %v2466_v31 = vmax.f32 %v2293_v30, 0.0 }
 0x586   :  { %v2510_v59 = vpack.c.bf16 %v2465_v23, %v2462_v29 }
 0x587   :  { %v2511_v13 = vpack.c.bf16 %v2466_v31, %v2463_v38  ;;  %v2296_v60 = vpop.f32.mrb[100].mxu0 }
 0x588   :  { %v2297_v4 = vadd.f32 %v2296_v60, %v5116_v56  ;;  %v2298_v6 = vpop.f32.mrb[101].mxu0 }
 0x589   :  { %v2299_v46 = vadd.f32 %v2298_v6, %v5116_v56  ;;  %v2300_v19 = vpop.f32.mrb[102].mxu0  ;;  %2696 = vmatprep.subr.bf16.mxu1 %v2511_v13 }
 0x58a   :  { %v2301_v33 = vadd.f32 %v2300_v19, %v5118_v37  ;;  %v2302_v22 = vpop.f32.mrb[103].mxu0  ;;  %2697 = vmatpush1.bf16.msra.mxu1 %v2510_v59  ;;  %v2468_v54 = vmax.f32 %v2297_v4, 0.0 }
 0x58b   :  { %v2303_v5 = vadd.f32 %v2302_v22, %v5118_v37  ;;  %v2469_v49 = vmax.f32 %v2299_v46, 0.0 }
 0x58c   :  { %v2471_v48 = vmax.f32 %v2301_v33, 0.0 }
 0x58d   :  { %v2472_v55 = vmax.f32 %v2303_v5, 0.0 }
 0x58e   :  { %v2513_v2 = vpack.c.bf16 %v2471_v48, %v2468_v54 }
 0x58f   :  { %v2514_v50 = vpack.c.bf16 %v2472_v55, %v2469_v49  ;;  %v2306_v51 = vpop.f32.mrb[104].mxu0 }
 0x590   :  { %v2307_v52 = vadd.f32 %v2306_v51, %v5120_v39  ;;  %v2308_v53 = vpop.f32.mrb[105].mxu0 }
 0x591   :  { %v2309_v56 = vadd.f32 %v2308_v53, %v5120_v39  ;;  %v2310_v10 = vpop.f32.mrb[106].mxu0  ;;  %2698 = vmatprep.subr.bf16.mxu1 %v2514_v50 }
 0x592   :  { %v2311_v63 = vadd.f32 %v2310_v10, %v5122_v32  ;;  %v2312_v42 = vpop.f32.mrb[107].mxu0  ;;  %2699 = vmatpush1.bf16.msra.mxu1 %v2513_v2  ;;  %v2474_v35 = vmax.f32 %v2307_v52, 0.0 }
 0x593   :  { %v2313_v37 = vadd.f32 %v2312_v42, %v5122_v32  ;;  %v2475_v8 = vmax.f32 %v2309_v56, 0.0 }
 0x594   :  { %v2477_v15 = vmax.f32 %v2311_v63, 0.0 }
 0x595   :  { %v2478_v16 = vmax.f32 %v2313_v37, 0.0 }
 0x596   :  { %v2516_v9 = vpack.c.bf16 %v2477_v15, %v2474_v35 }
 0x597   :  { %v2517_v62 = vpack.c.bf16 %v2478_v16, %v2475_v8  ;;  %v2316_v3 = vpop.f32.mrb[108].mxu0 }
 0x598   :  { %v2317_v40 = vadd.f32 %v2316_v3, %v5124_v41  ;;  %v2318_v26 = vpop.f32.mrb[109].mxu0 }
 0x599   :  { %v2319_v39 = vadd.f32 %v2318_v26, %v5124_v41  ;;  %v2320_v27 = vpop.f32.mrb[110].mxu0  ;;  %2700 = vmatprep.subr.bf16.mxu1 %v2517_v62 }
 0x59a   :  { %v2321_v57 = vadd.f32 %v2320_v27, %v5127_v25  ;;  %v2322_v17 = vpop.f32.mrb[111].mxu0  ;;  %2701 = vmatpush1.bf16.msra.mxu1 %v2516_v9  ;;  %v2480_v14 = vmax.f32 %v2317_v40, 0.0 }
 0x59b   :  { %v2323_v32 = vadd.f32 %v2322_v17, %v5127_v25  ;;  %v2481_v30 = vmax.f32 %v2319_v39, 0.0 }
 0x59c   :  { %v2483_v58 = vmax.f32 %v2321_v57, 0.0 }
 0x59d   :  { %v2484_v29 = vmax.f32 %v2323_v32, 0.0 }
 0x59e   :  { %v2519_v23 = vpack.c.bf16 %v2483_v58, %v2480_v14 }
 0x59f   :  { %v2520_v38 = vpack.c.bf16 %v2484_v29, %v2481_v30  ;;  %v2326_v31 = vpop.f32.mrb[112].mxu0 }
 0x5a0   :  { %v2327_v59 = vadd.f32 %v2326_v31, %v5132_v44  ;;  %v2328_v13 = vpop.f32.mrb[113].mxu0 }
 0x5a1   :  { %v2329_v41 = vadd.f32 %v2328_v13, %v5132_v44  ;;  %v2330_v60 = vpop.f32.mrb[114].mxu0  ;;  %2702 = vmatprep.subr.bf16.mxu1 %v2520_v38 }
 0x5a2   :  { %v2331_v4 = vadd.f32 %v2330_v60, %v5134_v21  ;;  %v2332_v6 = vpop.f32.mrb[115].mxu0  ;;  %2703 = vmatpush1.bf16.msra.mxu1 %v2519_v23  ;;  %v2486_v46 = vmax.f32 %v2327_v59, 0.0 }
 0x5a3   :  { %v2333_v25 = vadd.f32 %v2332_v6, %v5134_v21  ;;  %v2487_v33 = vmax.f32 %v2329_v41, 0.0  ;;  %v3918_v41 = vmov 0.0  }
 0x5a4   :  { %v2489_v19 = vmax.f32 %v2331_v4, 0.0 }
 0x5a5   :  { %v2490_v22 = vmax.f32 %v2333_v25, 0.0 }
 0x5a6   :  { %v2522_v5 = vpack.c.bf16 %v2489_v19, %v2486_v46 }
 0x5a7   :  { %v2523_v54 = vpack.c.bf16 %v2490_v22, %v2487_v33  ;;  %v2336_v48 = vpop.f32.mrb[116].mxu0 }
 0x5a8   :  { %v2337_v49 = vadd.f32 %v2336_v48, %v5139_v1  ;;  %v2338_v55 = vpop.f32.mrb[117].mxu0 }
 0x5a9   :  { %v2339_v44 = vadd.f32 %v2338_v55, %v5139_v1  ;;  %v2340_v2 = vpop.f32.mrb[118].mxu0  ;;  %2704 = vmatprep.subr.bf16.mxu1 %v2523_v54 }
 0x5aa   :  { %v2341_v50 = vadd.f32 %v2340_v2, %v5142_v18  ;;  %v2342_v51 = vpop.f32.mrb[119].mxu0  ;;  %2705 = vmatpush1.bf16.msra.mxu1 %v2522_v5  ;;  %v2492_v52 = vmax.f32 %v2337_v49, 0.0 }
 0x5ab   :  { %v2343_v21 = vadd.f32 %v2342_v51, %v5142_v18  ;;  %v2493_v56 = vmax.f32 %v2339_v44, 0.0 }
 0x5ac   :  { %v2495_v53 = vmax.f32 %v2341_v50, 0.0 }
 0x5ad   :  { %v2496_v10 = vmax.f32 %v2343_v21, 0.0 }
 0x5ae   :  { %v2525_v63 = vpack.c.bf16 %v2495_v53, %v2492_v52 }
 0x5af   :  { %v2526_v42 = vpack.c.bf16 %v2496_v10, %v2493_v56  ;;  %v2346_v37 = vpop.f32.mrb[120].mxu0 }
 0x5b0   :  { %v2347_v35 = vadd.f32 %v2346_v37, %v5145_v34  ;;  %v2348_v15 = vpop.f32.mrb[121].mxu0 }
 0x5b1   :  { %v2349_v1 = vadd.f32 %v2348_v15, %v5145_v34  ;;  %v2350_v8 = vpop.f32.mrb[122].mxu0  ;;  %2706 = vmatprep.subr.bf16.mxu1 %v2526_v42 }
 0x5b2   :  { %v2351_v16 = vadd.f32 %v2350_v8, %v5149_v47  ;;  %v2352_v9 = vpop.f32.mrb[123].mxu0  ;;  %2707 = vmatpush1.bf16.msra.mxu1 %v2525_v63  ;;  %v2498_v62 = vmax.f32 %v2347_v35, 0.0 }
 0x5b3   :  { %v2353_v18 = vadd.f32 %v2352_v9, %v5149_v47  ;;  %v2499_v40 = vmax.f32 %v2349_v1, 0.0 }
 0x5b4   :  { %v2501_v3 = vmax.f32 %v2351_v16, 0.0 }
 0x5b5   :  { %v2502_v26 = vmax.f32 %v2353_v18, 0.0 }
 0x5b6   :  { %v2528_v39 = vpack.c.bf16 %v2501_v3, %v2498_v62 }
 0x5b7   :  { %v2529_v27 = vpack.c.bf16 %v2502_v26, %v2499_v40  ;;  %v2356_v57 = vpop.f32.mrb[124].mxu0 }
 0x5b8   :  { %v2357_v17 = vadd.f32 %v2356_v57, %v5152_v7  ;;  %v2358_v32 = vpop.f32.mrb[125].mxu0 }
 0x5b9   :  { %v2359_v34 = vadd.f32 %v2358_v32, %v5152_v7  ;;  %v2360_v14 = vpop.f32.mrb[126].mxu0  ;;  %2708 = vmatprep.subr.bf16.mxu1 %v2529_v27  ;;  %v5252_v7 = vpop.permute.xlu1 %2575 }
 0x5ba   :  { %v2361_v58 = vadd.f32 %v2360_v14, %v5155_v20  ;;  %v2362_v30 = vpop.f32.mrb[127].mxu0  ;;  %2709 = vmatpush1.bf16.msra.mxu1 %v2528_v39  ;;  %v2504_v29 = vmax.f32 %v2357_v17, 0.0 }
 0x5bb   :  { %v2363_v47 = vadd.f32 %v2362_v30, %v5155_v20  ;;  %v2505_v38 = vmax.f32 %v2359_v34, 0.0 }
 0x5bc   :  { %v2507_v23 = vmax.f32 %v2361_v58, 0.0 }
 0x5bd   :  { %v2508_v31 = vmax.f32 %v2363_v47, 0.0 }
 0x5be   :  { %v2531_v59 = vpack.c.bf16 %v2507_v23, %v2504_v29 }
 0x5bf   :  { %v2532_v13 = vpack.c.bf16 %v2508_v31, %v2505_v38 }
 0x5c1   :  { %2710 = vmatprep.subr.bf16.mxu1 %v2532_v13 }
 0x5c2   :  { %2711 = vmatpush1.bf16.msra.mxu1 %v2531_v59 }
 0x5c3   :  { %3755 = vmatprep.subr.bf16.mxu1 %v3918_v41 }
 0x5c5   :  { %2729 = vmatmul.mubr.bf16.vlgmr.msra.gmra.mrb[112].mxu1 %v5108_v61  ;;  %v5250_v61 = vpop.permute.xlu0 %2570 }
 0x5c6   :  { %2738 = vmatprep.mubr.bf16.mxu1 %v3917_v0 }
 0x5c9   :  { %v5254_v20 = vpop.permute.xlu0 %2580 }
 0x5cd   :  { %2739 = vmatmul.mubr.bf16.gmra.mrb[116].mxu1 %v5163_v28  ;;  %v5258_v28 = vpop.permute.xlu1 %2585 }
 0x5ce   :  { %2748 = vmatprep.mubr.bf16.mxu1 %v3917_v0 }
 0x5d5   :  { %2749 = vmatmul.mubr.bf16.gmra.mrb[120].mxu1 %v5168_v11  ;;  %v5260_v11 = vpop.permute.xlu0 %2590 }
 0x5d6   :  { %2758 = vmatprep.mubr.bf16.mxu1 %v3917_v0 }
 0x5dd   :  { %2759 = vmatmul.mubr.bf16.gmra.mrb[124].mxu1 %v5175_v12  ;;  %v5262_v12 = vpop.permute.xlu1 %2595 }
 0x5de   :  { %2768 = vmatprep.mubr.bf16.mxu1 %v3917_v0 }
 0x5e1   :  { %v5267_v60 = vpop.permute.xlu1 %2605 }
 0x5e5   :  { %2769 = vmatmul.mubr.bf16.gmra.mrb[128].mxu1 %v5180_v36  ;;  %v5264_v36 = vpop.permute.xlu0 %2600  ;;  %v5274_v49 = vpop.permute.xlu1 %2615 }
 0x5e6   :  { %2778 = vmatprep.mubr.bf16.mxu1 %v3917_v0 }
 0x5e9   :  { %v5272_v22 = vpop.permute.xlu0 %2610  ;;  %v5283_v37 = vpop.permute.xlu1 %2625 }
 0x5ed   :  { %2779 = vmatmul.mubr.bf16.gmra.mrb[132].mxu1 %v5187_v43  ;;  %v5280_v56 = vpop.permute.xlu0 %2620  ;;  %v5292_v27 = vpop.permute.xlu1 %2635 }
 0x5ee   :  { %2788 = vmatprep.mubr.bf16.mxu1 %v3917_v0 }
 0x5f1   :  { %v5287_v62 = vpop.permute.xlu0 %2630  ;;  %v5299_v31 = vpop.permute.xlu1 %2645 }
 0x5f5   :  { %2789 = vmatmul.mubr.bf16.gmra.mrb[136].mxu1 %v5192_v45  ;;  %v5296_v30 = vpop.permute.xlu0 %2640 }
 0x5f6   :  { %2798 = vmatprep.mubr.bf16.mxu1 %v3917_v0 }
 0x5fd   :  { %2799 = vmatmul.mubr.bf16.gmra.mrb[140].mxu1 %v5199_v24 }
 0x5fe   :  { %3771 = vmatprep.mubr.msk.bf16.mxu1 %vm3919_vm2, %v3918_v41 }
 0x608   :  { %v3741_v0 = vpop.f32.mrb[128].mxu0 }
 0x609   :  { %v2852_v43 = vadd.f32 %v3741_v0, %v5254_v20  ;;  %v2843_v45 = vpop.f32.mrb[129].mxu0 }
 0x60a   :  { %v2844_v4 = vadd.f32 %v2843_v45, %v5250_v61  ;;  %v3742_v24 = vpop.f32.mrb[130].mxu0 }
 0x60b   :  { %v2855_v6 = vadd.f32 %v3742_v24, %v5258_v28  ;;  %v2846_v25 = vpop.f32.mrb[131].mxu0  ;;  %v2914_v19 = vmax.f32 %v2852_v43, 0.0 }
 0x60c   :  { %v2847_v46 = vadd.f32 %v2846_v25, %v5252_v7  ;;  %v2908_v5 = vmax.f32 %v2844_v4, 0.0 }
 0x60d   :  { %v2917_v33 = vmax.f32 %v2855_v6, 0.0 }
 0x60e   :  { %v2911_v54 = vmax.f32 %v2847_v46, 0.0 }
 0x60f   :  { %v2959_v48 = vpack.c.bf16 %v2917_v33, %v2914_v19  ;;  %v5310_v33 = vld [vmem:[%s5355_s5] sm:$0x1] }
 0x610   :  { %v2956_v55 = vpack.c.bf16 %v2911_v54, %v2908_v5  ;;  %v3745_v44 = vpop.f32.mrb[132].mxu0 }
 0x611   :  { %v2868_v2 = vadd.f32 %v3745_v44, %v5264_v36  ;;  %v2859_v50 = vpop.f32.mrb[133].mxu0 }
 0x612   :  { %v2860_v51 = vadd.f32 %v2859_v50, %v5260_v11  ;;  %v3746_v21 = vpop.f32.mrb[134].mxu0  ;;  %3756 = vmatpush3.bf16.msra.mxu1 %v2956_v55 }
 0x613   :  { %v2871_v52 = vadd.f32 %v3746_v21, %v5267_v60  ;;  %v2862_v53 = vpop.f32.mrb[135].mxu0  ;;  %3757 = vmatprep.subr.bf16.mxu1 %v3918_v41  ;;  %v2926_v63 = vmax.f32 %v2868_v2, 0.0 }
 0x614   :  { %v2863_v10 = vadd.f32 %v2862_v53, %v5262_v12  ;;  %v2920_v35 = vmax.f32 %v2860_v51, 0.0 }
 0x615   :  { %v2929_v42 = vmax.f32 %v2871_v52, 0.0 }
 0x616   :  { %v2923_v15 = vmax.f32 %v2863_v10, 0.0  ;;  %3758 = vmatpush3.bf16.msra.mxu1 %v2959_v48 }
 0x617   :  { %v2965_v1 = vpack.c.bf16 %v2929_v42, %v2926_v63  ;;  %3759 = vmatprep.subr.bf16.mxu1 %v3918_v41 }
 0x618   :  { %v2962_v8 = vpack.c.bf16 %v2923_v15, %v2920_v35  ;;  %v3749_v16 = vpop.f32.mrb[136].mxu0 }
 0x619   :  { %v2884_v9 = vadd.f32 %v3749_v16, %v5280_v56  ;;  %v2875_v18 = vpop.f32.mrb[137].mxu0 }
 0x61a   :  { %v2876_v3 = vadd.f32 %v2875_v18, %v5272_v22  ;;  %v3750_v40 = vpop.f32.mrb[138].mxu0  ;;  %3760 = vmatpush3.bf16.msra.mxu1 %v2962_v8 }
 0x61b   :  { %v2887_v26 = vadd.f32 %v3750_v40, %v5283_v37  ;;  %v2878_v39 = vpop.f32.mrb[139].mxu0  ;;  %3761 = vmatprep.subr.bf16.mxu1 %v3918_v41  ;;  %v2938_v17 = vmax.f32 %v2884_v9, 0.0 }
 0x61c   :  { %v2879_v57 = vadd.f32 %v2878_v39, %v5274_v49  ;;  %v2932_v34 = vmax.f32 %v2876_v3, 0.0 }
 0x61d   :  { %v2941_v32 = vmax.f32 %v2887_v26, 0.0 }
 0x61e   :  { %v2935_v14 = vmax.f32 %v2879_v57, 0.0  ;;  %3762 = vmatpush3.bf16.msra.mxu1 %v2965_v1 }
 0x61f   :  { %v2971_v58 = vpack.c.bf16 %v2941_v32, %v2938_v17  ;;  %3763 = vmatprep.subr.bf16.mxu1 %v3918_v41 }
 0x620   :  { %v2968_v47 = vpack.c.bf16 %v2935_v14, %v2932_v34  ;;  %v3753_v29 = vpop.f32.mrb[140].mxu0 }
 0x621   :  { %v2900_v23 = vadd.f32 %v3753_v29, %v5296_v30  ;;  %v2891_v38 = vpop.f32.mrb[141].mxu0 }
 0x622   :  { %v2892_v59 = vadd.f32 %v2891_v38, %v5287_v62  ;;  %v3754_v13 = vpop.f32.mrb[142].mxu0  ;;  %3764 = vmatpush3.bf16.msra.mxu1 %v2968_v47 }
 0x623   :  { %v2903_v0 = vadd.f32 %v3754_v13, %v5299_v31  ;;  %v2894_v43 = vpop.f32.mrb[143].mxu0  ;;  %3765 = vmatprep.subr.bf16.mxu1 %v3918_v41  ;;  %v2950_v4 = vmax.f32 %v2900_v23, 0.0 }
 0x624   :  { %v2895_v45 = vadd.f32 %v2894_v43, %v5292_v27  ;;  %v2944_v6 = vmax.f32 %v2892_v59, 0.0 }
 0x625   :  { %v2953_v24 = vmax.f32 %v2903_v0, 0.0 }
 0x626   :  { %v2947_v25 = vmax.f32 %v2895_v45, 0.0  ;;  %3766 = vmatpush3.bf16.msra.mxu1 %v2971_v58 }
 0x627   :  { %v2977_v46 = vpack.c.bf16 %v2953_v24, %v2950_v4  ;;  %3767 = vmatprep.subr.bf16.mxu1 %v3918_v41 }
 0x628   :  { %v2974_v19 = vpack.c.bf16 %v2947_v25, %v2944_v6 }
 0x62a   :  { %3768 = vmatpush3.bf16.msra.mxu1 %v2974_v19 }
 0x62b   :  { %3769 = vmatprep.subr.bf16.mxu1 %v3918_v41 }
 0x62e   :  { %3770 = vmatpush3.bf16.msra.mxu1 %v2977_v46 }
 0x631   :  { %3772 = vmatmul.mubr.bf16.vlgmr.msra.gmra.mrb[144].mxu1 %v5310_v33 }
 0x698   :  { %v2730_v5 = vpop.f32.mrb[112].mxu1 }
 0x699   :  { %v2731_v54 = vadd.f32 %v2730_v5, %v5250_v61  ;;  %v2732_v48 = vpop.f32.mrb[113].mxu1 }
 0x69a   :  { %v2733_v55 = vadd.f32 %v2732_v48, %v5250_v61  ;;  %v2734_v44 = vpop.f32.mrb[114].mxu1 }
 0x69b   :  { %v2735_v2 = vadd.f32 %v2734_v44, %v5252_v7  ;;  %v2736_v50 = vpop.f32.mrb[115].mxu1  ;;  %v2906_v51 = vmax.f32 %v2731_v54, 0.0 }
 0x69c   :  { %v2737_v41 = vadd.f32 %v2736_v50, %v5252_v7  ;;  %v2907_v52 = vmax.f32 %v2733_v55, 0.0 }
 0x69d   :  { %v2909_v21 = vmax.f32 %v2735_v2, 0.0 }
 0x69e   :  { %v2910_v53 = vmax.f32 %v2737_v41, 0.0 }
 0x69f   :  { %v2954_v10 = vpack.c.bf16 %v2909_v21, %v2906_v51 }
 0x6a0   :  { %v2955_v63 = vpack.c.bf16 %v2910_v53, %v2907_v52  ;;  %v2740_v42 = vpop.f32.mrb[116].mxu1 }
 0x6a1   :  { %v2741_v35 = vadd.f32 %v2740_v42, %v5254_v20  ;;  %v2742_v15 = vpop.f32.mrb[117].mxu1 }
 0x6a2   :  { %v2743_v1 = vadd.f32 %v2742_v15, %v5254_v20  ;;  %v2744_v8 = vpop.f32.mrb[118].mxu1  ;;  %2989 = vmatprep.subr.bf16.mxu0 %v2955_v63 }
 0x6a3   :  { %v2745_v61 = vadd.f32 %v2744_v8, %v5258_v28  ;;  %v2746_v16 = vpop.f32.mrb[119].mxu1  ;;  %2990 = vmatpush1.bf16.msra.mxu0 %v2954_v10  ;;  %v2912_v9 = vmax.f32 %v2741_v35, 0.0 }
 0x6a4   :  { %v2747_v7 = vadd.f32 %v2746_v16, %v5258_v28  ;;  %v2913_v3 = vmax.f32 %v2743_v1, 0.0 }
 0x6a5   :  { %v2915_v18 = vmax.f32 %v2745_v61, 0.0 }
 0x6a6   :  { %v2916_v40 = vmax.f32 %v2747_v7, 0.0 }
 0x6a7   :  { %v2957_v26 = vpack.c.bf16 %v2915_v18, %v2912_v9 }
 0x6a8   :  { %v2958_v39 = vpack.c.bf16 %v2916_v40, %v2913_v3  ;;  %v2750_v57 = vpop.f32.mrb[120].mxu1 }
 0x6a9   :  { %v2751_v17 = vadd.f32 %v2750_v57, %v5260_v11  ;;  %v2752_v32 = vpop.f32.mrb[121].mxu1 }
 0x6aa   :  { %v2753_v20 = vadd.f32 %v2752_v32, %v5260_v11  ;;  %v2754_v34 = vpop.f32.mrb[122].mxu1  ;;  %2991 = vmatprep.subr.bf16.mxu0 %v2958_v39 }
 0x6ab   :  { %v2755_v14 = vadd.f32 %v2754_v34, %v5262_v12  ;;  %v2756_v58 = vpop.f32.mrb[123].mxu1  ;;  %2992 = vmatpush1.bf16.msra.mxu0 %v2957_v26  ;;  %v2918_v47 = vmax.f32 %v2751_v17, 0.0 }
 0x6ac   :  { %v2757_v28 = vadd.f32 %v2756_v58, %v5262_v12  ;;  %v2919_v23 = vmax.f32 %v2753_v20, 0.0 }
 0x6ad   :  { %v2921_v29 = vmax.f32 %v2755_v14, 0.0 }
 0x6ae   :  { %v2922_v38 = vmax.f32 %v2757_v28, 0.0 }
 0x6af   :  { %v2960_v59 = vpack.c.bf16 %v2921_v29, %v2918_v47 }
 0x6b0   :  { %v2961_v13 = vpack.c.bf16 %v2922_v38, %v2919_v23  ;;  %v2760_v0 = vpop.f32.mrb[124].mxu1 }
 0x6b1   :  { %v2761_v43 = vadd.f32 %v2760_v0, %v5264_v36  ;;  %v2762_v45 = vpop.f32.mrb[125].mxu1 }
 0x6b2   :  { %v2763_v11 = vadd.f32 %v2762_v45, %v5264_v36  ;;  %v2764_v4 = vpop.f32.mrb[126].mxu1  ;;  %2993 = vmatprep.subr.bf16.mxu0 %v2961_v13 }
 0x6b3   :  { %v2765_v24 = vadd.f32 %v2764_v4, %v5267_v60  ;;  %v2766_v6 = vpop.f32.mrb[127].mxu1  ;;  %2994 = vmatpush1.bf16.msra.mxu0 %v2960_v59  ;;  %v2924_v25 = vmax.f32 %v2761_v43, 0.0 }
 0x6b4   :  { %v2767_v12 = vadd.f32 %v2766_v6, %v5267_v60  ;;  %v2925_v19 = vmax.f32 %v2763_v11, 0.0 }
 0x6b5   :  { %v2927_v46 = vmax.f32 %v2765_v24, 0.0 }
 0x6b6   :  { %v2928_v5 = vmax.f32 %v2767_v12, 0.0 }
 0x6b7   :  { %v2963_v54 = vpack.c.bf16 %v2927_v46, %v2924_v25 }
 0x6b8   :  { %v2964_v48 = vpack.c.bf16 %v2928_v5, %v2925_v19  ;;  %v2770_v55 = vpop.f32.mrb[128].mxu1 }
 0x6b9   :  { %v2771_v44 = vadd.f32 %v2770_v55, %v5272_v22  ;;  %v2772_v2 = vpop.f32.mrb[129].mxu1  ;;  %v3920_v55 = vmov 1966171168  }
 0x6ba   :  { %v2773_v36 = vadd.f32 %v2772_v2, %v5272_v22  ;;  %v2774_v50 = vpop.f32.mrb[130].mxu1  ;;  %2995 = vmatprep.subr.bf16.mxu0 %v2964_v48 }
 0x6bb   :  { %v2775_v41 = vadd.f32 %v2774_v50, %v5274_v49  ;;  %v2776_v51 = vpop.f32.mrb[131].mxu1  ;;  %2996 = vmatpush1.bf16.msra.mxu0 %v2963_v54  ;;  %v2930_v21 = vmax.f32 %v2771_v44, 0.0  ;;  %v2985_v54 = vlaneseq  ;;  %v3075_v44 = vunpack.c.l.s4 %v3920_v55 }
 0x6bc   :  { %v2777_v60 = vadd.f32 %v2776_v51, %v5274_v49  ;;  %v2931_v53 = vmax.f32 %v2773_v36, 0.0 }
 0x6bd   :  { %v2933_v52 = vmax.f32 %v2775_v41, 0.0  ;;  %v2986_v48 = vshrl.u32 %v2985_v54, 7  ;;  %v3076_v36 = vunpack.c.0.s8 %v3075_v44  ;;  %vm3099_vm3 = vcmp.lt.s32.totalorder %v2985_v54, 384 }
 0x6be   :  { %v2934_v10 = vmax.f32 %v2777_v60, 0.0 }
 0x6bf   :  { %v2966_v63 = vpack.c.bf16 %v2933_v52, %v2930_v21  ;;  %v2987_v2 = vsub.s32 0, %v2986_v48  ;;  %v3079_v21 = vsub.s32 %v3076_v36, %v2986_v48 }
 0x6c0   :  { %v2967_v42 = vpack.c.bf16 %v2934_v10, %v2931_v53  ;;  %v2780_v35 = vpop.f32.mrb[132].mxu1 }
 0x6c1   :  { %v2781_v15 = vadd.f32 %v2780_v35, %v5280_v56  ;;  %v2782_v1 = vpop.f32.mrb[133].mxu1 }
 0x6c2   :  { %v2783_v22 = vadd.f32 %v2782_v1, %v5280_v56  ;;  %v2784_v8 = vpop.f32.mrb[134].mxu1  ;;  %2997 = vmatprep.subr.bf16.mxu0 %v2967_v42 }
 0x6c3   :  { %v2785_v61 = vadd.f32 %v2784_v8, %v5283_v37  ;;  %v2786_v16 = vpop.f32.mrb[135].mxu1  ;;  %2998 = vmatpush1.bf16.msra.mxu0 %v2966_v63  ;;  %v2936_v7 = vmax.f32 %v2781_v15, 0.0 }
 0x6c4   :  { %v2787_v49 = vadd.f32 %v2786_v16, %v5283_v37  ;;  %v2937_v18 = vmax.f32 %v2783_v22, 0.0 }
 0x6c5   :  { %v2939_v9 = vmax.f32 %v2785_v61, 0.0 }
 0x6c6   :  { %v2940_v3 = vmax.f32 %v2787_v49, 0.0 }
 0x6c7   :  { %v2969_v40 = vpack.c.bf16 %v2939_v9, %v2936_v7 }
 0x6c8   :  { %v2970_v26 = vpack.c.bf16 %v2940_v3, %v2937_v18  ;;  %v2790_v39 = vpop.f32.mrb[136].mxu1 }
 0x6c9   :  { %v2791_v57 = vadd.f32 %v2790_v39, %v5287_v62  ;;  %v2792_v17 = vpop.f32.mrb[137].mxu1 }
 0x6ca   :  { %v2793_v56 = vadd.f32 %v2792_v17, %v5287_v62  ;;  %v2794_v32 = vpop.f32.mrb[138].mxu1  ;;  %2999 = vmatprep.subr.bf16.mxu0 %v2970_v26 }
 0x6cb   :  { %v2795_v20 = vadd.f32 %v2794_v32, %v5292_v27  ;;  %v2796_v34 = vpop.f32.mrb[139].mxu1  ;;  %3000 = vmatpush1.bf16.msra.mxu0 %v2969_v40  ;;  %v2942_v14 = vmax.f32 %v2791_v57, 0.0 }
 0x6cc   :  { %v2797_v37 = vadd.f32 %v2796_v34, %v5292_v27  ;;  %v2943_v28 = vmax.f32 %v2793_v56, 0.0 }
 0x6cd   :  { %v2945_v58 = vmax.f32 %v2795_v20, 0.0 }
 0x6ce   :  { %v2946_v47 = vmax.f32 %v2797_v37, 0.0 }
 0x6cf   :  { %v2972_v29 = vpack.c.bf16 %v2945_v58, %v2942_v14 }
 0x6d0   :  { %v2973_v23 = vpack.c.bf16 %v2946_v47, %v2943_v28  ;;  %v2800_v38 = vpop.f32.mrb[140].mxu1 }
 0x6d1   :  { %v2801_v59 = vadd.f32 %v2800_v38, %v5296_v30  ;;  %v2802_v13 = vpop.f32.mrb[141].mxu1 }
 0x6d2   :  { %v2803_v62 = vadd.f32 %v2802_v13, %v5296_v30  ;;  %v2804_v0 = vpop.f32.mrb[142].mxu1  ;;  %3001 = vmatprep.subr.bf16.mxu0 %v2973_v23 }
 0x6d3   :  { %v2805_v43 = vadd.f32 %v2804_v0, %v5299_v31  ;;  %v2806_v45 = vpop.f32.mrb[143].mxu1  ;;  %3002 = vmatpush1.bf16.msra.mxu0 %v2972_v29  ;;  %v2948_v11 = vmax.f32 %v2801_v59, 0.0 }
 0x6d4   :  { %v2807_v27 = vadd.f32 %v2806_v45, %v5299_v31  ;;  %v2949_v24 = vmax.f32 %v2803_v62, 0.0  ;;  %v2983_v31 = vpop.permute.xlu0 %2982 }
 0x6d5   :  { %v2951_v4 = vmax.f32 %v2805_v43, 0.0  ;;  %v2988_v50 = vrot.slane %v2983_v31, %v2987_v2 }
 0x6d6   :  { %v2952_v6 = vmax.f32 %v2807_v27, 0.0 }
 0x6d7   :  { %v2975_v12 = vpack.c.bf16 %v2951_v4, %v2948_v11 }
 0x6d8   :  { %v2976_v25 = vpack.c.bf16 %v2952_v6, %v2949_v24 }
 0x6da   :  { %3003 = vmatprep.subr.bf16.mxu0 %v2976_v25 }
 0x6db   :  { %3004 = vmatpush1.bf16.msra.mxu0 %v2975_v12 }
 0x6de   :  { %3022 = vmatmul.mubr.bf16.vlgmr.msra.gmra.mrb[144].mxu0 %v5310_v33 }
 0x704   :  { %v3064_v46 = vpop.f32.mrb[144].mxu1 }
 0x705   :  { %v3773_v30 = vpop.f32.mrb[145].mxu1  ;;  %v3065_v52 = vadd.f32 %v3064_v46, %v2988_v50 }
 0x706   :  { %v3067_v19 = vpop.f32.mrb[146].mxu1 }
 0x707   :  { %v3774_v5 = vpop.f32.mrb[147].mxu1  ;;  %v3087_v42 = vrot.slane %v3065_v52, %v3079_v21 }
 0x7b1   :  { %v3023_v41 = vpop.f32.mrb[144].mxu0 }
 0x7b2   :  { %v3024_v51 = vadd.f32 %v3023_v41, %v2988_v50  ;;  %v3025_v60 = vpop.f32.mrb[145].mxu0 }
 0x7b3   :  { %v3026_v53 = vadd.f32 %v3025_v60, %v2988_v50  ;;  %v3027_v10 = vpop.f32.mrb[146].mxu0 }
 0x7b4   :  { %v3028_v33 = vpop.f32.mrb[147].mxu0 }
 0x7b5   :  { %v3073_v63 = vcombine.low %v3024_v51, %v3026_v53 }
 0x7b7   :  { %v3080_v35 = vrot.slane %v3073_v63, %v3079_v21 }
 0x7b9   :  { %v3088_v15 = vcombine.low %v3080_v35, %v3087_v42 }
 0x7bb   :  { %v3095_v1 = vrot.slane %v3088_v15, %v3079_v21 }
 0x7bd   :  { %3101 = vst.msk [vmem:[%s5356_s7] sm:$0x7] %vm3099_vm3, %v3095_v1 }

</bundles_post_ra>
